<compile_context>
chip_gen: v7x
topology: tpu7x:2x2x1
jax: 0.10.0
libtpu: 0.0.40
codegen_flags: <defaults>
</compile_context>

<pallas_src>
import functools

import jax
import jax.numpy as jnp
from jax import lax
from jax.experimental import pallas as pl
from jax.experimental.pallas import tpu as pltpu


# ----------------------------------------------------------------------------
# helpers
# ----------------------------------------------------------------------------
def _pick_tile(dim, target, align):
    """Largest tile <= target that evenly divides `dim` and respects the TPU
    (sublane/lane) alignment; falls back to the full dim (always a legal block,
    though for huge unaligned dims this can exceed the VMEM budget)."""
    if dim <= target:
        return dim
    t = (target // align) * align
    while t >= align:
        if dim % t == 0:
            return t
        t -= align
    return dim


def _kv_spec(block_shape, index_map, block_bytes):
    """K/V block indices only change with the batch coordinate, so double
    buffering only wastes VMEM once the blocks are large (matters on v7x's
    64 MiB VMEM).  Single-buffer them past a threshold; the single exposed DMA
    per batch is amortized over Sq//tq grid steps."""
    if block_bytes > 8 * 1024 * 1024:
        try:
            return pl.BlockSpec(block_shape, index_map, pipeline_mode=pl.Buffered(1))
        except TypeError:  # Pallas build without pipeline_mode support
            pass
    return pl.BlockSpec(block_shape, index_map)


# ----------------------------------------------------------------------------
# Kernel 1: fused Q/K/V projection.
#   grid = (M/tm, d_proj/tn, 3, Din/tk); axis 2 selects which input tensor and
#   which weight slab; output is packed (3, M, d_proj) bf16.
# ----------------------------------------------------------------------------
def _qkv_kernel(q_ref, k_ref, v_ref, w_ref, b_ref, o_ref, acc_ref):
    p = pl.program_id(2)   # 0 -> Q, 1 -> K, 2 -> V
    kk = pl.program_id(3)  # contraction step

    @pl.when(kk == 0)
    def _():
        acc_ref[...] = jnp.zeros_like(acc_ref)

    w = w_ref[0]  # (tk, tn) bf16 (stored bf16 in params -> no per-tile cast)

    def accumulate(x_ref):
        acc_ref[...] += jnp.dot(
            x_ref[...].astype(jnp.bfloat16),  # no-op if the input is bf16
            w, preferred_element_type=jnp.float32)

    @pl.when(p == 0)
    def _():
        accumulate(q_ref)

    @pl.when(p == 1)
    def _():
        accumulate(k_ref)

    @pl.when(p == 2)
    def _():
        accumulate(v_ref)

    @pl.when(kk == pl.num_programs(3) - 1)
    def _():
        o_ref[0] = (acc_ref[...] + b_ref[0]).astype(o_ref.dtype)


def qkv_project(q_in, k_in, v_in, w_qkv, b_qkv, *, tm=512, tn=512, tk=512):
    """q/k/v_in: (M, Din).  w_qkv: (3, Din, d_proj) bf16 (scale folded into the
    Q slab).  b_qkv: (3, 1, d_proj) f32.  Returns packed (3, M, d_proj) bf16."""
    M, Din = q_in.shape
    d_proj = w_qkv.shape[-1]
    tm = _pick_tile(M, tm, 8)
    tn = _pick_tile(d_proj, tn, 128)
    tk = _pick_tile(Din, tk, 128)
    kb = Din // tk

    # While a projection is not the active phase, park its input block on the
    # tile it last used / will use next so the pipeline never issues a
    # redundant DMA for the two inactive inputs.
    q_map = lambda i, j, p, kk: (i, jnp.where(p == 0, kk, kb - 1))
    k_map = lambda i, j, p, kk: (i, jnp.where(p == 1, kk,
                                              jnp.where(p == 0, 0, kb - 1)))
    v_map = lambda i, j, p, kk: (i, jnp.where(p == 2, kk, 0))

    return pl.pallas_call(
        _qkv_kernel,
        out_shape=jax.ShapeDtypeStruct((3, M, d_proj), jnp.bfloat16),
        grid_spec=pltpu.PrefetchScalarGridSpec(
            num_scalar_prefetch=0,
            grid=(M // tm, d_proj // tn, 3, Din // tk),
            in_specs=[
                pl.BlockSpec((tm, tk), q_map),
                pl.BlockSpec((tm, tk), k_map),
                pl.BlockSpec((tm, tk), v_map),
                pl.BlockSpec((1, tk, tn), lambda i, j, p, kk: (p, kk, j)),
                pl.BlockSpec((1, 1, tn), lambda i, j, p, kk: (p, 0, j)),
            ],
            out_specs=pl.BlockSpec((1, tm, tn), lambda i, j, p, kk: (p, i, j)),
            scratch_shapes=[pltpu.VMEM((tm, tn), jnp.float32)],
        ),
        compiler_params=pltpu.CompilerParams(
            dimension_semantics=("parallel", "parallel", "arbitrary", "arbitrary"),
            vmem_limit_bytes=32 * 1024 * 1024,
        ),
    )(q_in, k_in, v_in, w_qkv, b_qkv)


# ----------------------------------------------------------------------------
# Kernel 2: generic tiled linear  y = x @ W + b  (used for W_O and as the
# unfused fallback).  bf16 MXU operands, f32 accumulate.
# ----------------------------------------------------------------------------
def _linear_kernel(x_ref, w_ref, b_ref, o_ref, acc_ref):
    kk = pl.program_id(2)

    @pl.when(kk == 0)
    def _():
        acc_ref[...] = jnp.zeros_like(acc_ref)

    acc_ref[...] += jnp.dot(
        x_ref[...].astype(jnp.bfloat16),   # no-op when x is already bf16
        w_ref[...].astype(jnp.bfloat16),   # no-op: weights stored bf16 in params
        preferred_element_type=jnp.float32)

    @pl.when(kk == pl.num_programs(2) - 1)
    def _():
        o_ref[...] = (acc_ref[...] + b_ref[...]).astype(o_ref.dtype)


def linear(x, w, b, *, out_dtype, tm=512, tn=512, tk=512):
    """x: (M, Din), w: (Din, Dout), b: (Dout,) -> (M, Dout) out_dtype."""
    M, Din = x.shape
    Dout = w.shape[1]
    tm = _pick_tile(M, tm, 8)
    tn = _pick_tile(Dout, tn, 128)
    tk = _pick_tile(Din, tk, 128)
    b2 = b.reshape(1, Dout)
    return pl.pallas_call(
        _linear_kernel,
        out_shape=jax.ShapeDtypeStruct((M, Dout), out_dtype),
        grid_spec=pltpu.PrefetchScalarGridSpec(
            num_scalar_prefetch=0,
            grid=(M // tm, Dout // tn, Din // tk),
            in_specs=[
                pl.BlockSpec((tm, tk), lambda i, j, k: (i, k)),
                pl.BlockSpec((tk, tn), lambda i, j, k: (k, j)),
                pl.BlockSpec((1, tn), lambda i, j, k: (0, j)),
            ],
            out_specs=pl.BlockSpec((tm, tn), lambda i, j, k: (i, j)),
            scratch_shapes=[pltpu.VMEM((tm, tn), jnp.float32)],
        ),
        compiler_params=pltpu.CompilerParams(
            dimension_semantics=("parallel", "parallel", "arbitrary"),
            vmem_limit_bytes=32 * 1024 * 1024,
        ),
    )(x, w, b2)


# ----------------------------------------------------------------------------
# Kernel 3: scaled dot-product attention, all heads per grid step.
#   q/k/v stay lane-dense (rows, H*dk); heads are static lane slices; q already
#   carries the 1/sqrt(dk) scale (folded into W_Q).  Each head's probabilities
#   and context are written as they are produced (no concat epilogue).
# ----------------------------------------------------------------------------
def _sdpa_kernel(q_ref, k_ref, v_ref, ctx_ref, attn_ref, *, num_heads):
    d_proj = q_ref.shape[-1]
    dk = d_proj // num_heads

    # Collapse size-1 leading block dims (free): (tq, d_proj) / (Sk, d_proj).
    q = q_ref[...].reshape(-1, d_proj)   # bf16, pre-scaled by 1/sqrt(dk)
    k = k_ref[...].reshape(-1, d_proj)   # bf16
    v = v_ref[...].reshape(-1, d_proj)   # bf16

    # TODO(synk): when dk is not a multiple of 128, a head-major (B,H,S,dk)
    # layout (or 2-heads-per-128-lane packing) would avoid masked lane slices.
    for h in range(num_heads):           # static unroll over heads
        lo = h * dk
        # scores = q_h @ k_h^T without an explicit transpose (contract last dims)
        s = lax.dot_general(
            q[:, lo:lo + dk], k[:, lo:lo + dk], (((1,), (1,)), ((), ())),
            preferred_element_type=jnp.float32)          # (tq, Sk) f32

        m = jnp.max(s, axis=-1, keepdims=True)
        e = jnp.exp(s - m)                                # f32 softmax math
        denom = jnp.sum(e, axis=-1, keepdims=True)
        prob = e * pl.reciprocal(denom, approx=True)      # EUP approx recip

        attn_ref[0, h] = prob.astype(attn_ref.dtype)      # bf16 store by default
        ctx_ref[0, :, lo:lo + dk] = jnp.dot(
            prob.astype(jnp.bfloat16), v[:, lo:lo + dk],
            preferred_element_type=jnp.float32).astype(ctx_ref.dtype)


def _sdpa_call(operands, in_specs, *, B, Sq, Sk, d_proj, num_heads, tq, attn_dtype):
    kernel = functools.partial(_sdpa_kernel, num_heads=num_heads)
    # TODO(synk): for very long Sk on v7x (64 MiB VMEM), add a kv grid axis with
    # a two-pass softmax so the (H, tq, Sk) attention tile need not be resident.
    return pl.pallas_call(
        kernel,
        out_shape=(
            jax.ShapeDtypeStruct((B, Sq, d_proj), jnp.bfloat16),
            jax.ShapeDtypeStruct((B, num_heads, Sq, Sk), attn_dtype),
        ),
        grid_spec=pltpu.PrefetchScalarGridSpec(
            num_scalar_prefetch=0,
            grid=(B, Sq // tq),
            in_specs=in_specs,
            out_specs=[
                pl.BlockSpec((1, tq, d_proj), lambda b, qi: (b, qi, 0)),
                pl.BlockSpec((1, num_heads, tq, Sk), lambda b, qi: (b, 0, qi, 0)),
            ],
        ),
        compiler_params=pltpu.CompilerParams(
            dimension_semantics=("parallel", "parallel"),
            vmem_limit_bytes=40 * 1024 * 1024,
        ),
    )(*operands)


def sdpa_packed(qkv, *, num_heads, attn_dtype):
    """qkv: packed (3, B, S, d_proj) bf16 from qkv_project (Sq == Sk)."""
    _, B, S, d_proj = qkv.shape
    tq = _pick_tile(S, 256, 8)
    kv_bytes = S * d_proj * jnp.dtype(qkv.dtype).itemsize
    in_specs = [
        pl.BlockSpec((1, 1, tq, d_proj), lambda b, qi: (0, b, qi, 0)),
        _kv_spec((1, 1, S, d_proj), lambda b, qi: (1, b, 0, 0), kv_bytes),
        _kv_spec((1, 1, S, d_proj), lambda b, qi: (2, b, 0, 0), kv_bytes),
    ]
    return _sdpa_call((qkv, qkv, qkv), in_specs, B=B, Sq=S, Sk=S, d_proj=d_proj,
                      num_heads=num_heads, tq=tq, attn_dtype=attn_dtype)


def sdpa_separate(q_p, k_p, v_p, *, num_heads, attn_dtype):
    """Unfused fallback (cross-attention with Sq != Sk)."""
    B, Sq, d_proj = q_p.shape
    Sk = k_p.shape[1]
    tq = _pick_tile(Sq, 256, 8)
    kv_bytes = Sk * d_proj * jnp.dtype(k_p.dtype).itemsize
    in_specs = [
        pl.BlockSpec((1, tq, d_proj), lambda b, qi: (b, qi, 0)),
        _kv_spec((1, Sk, d_proj), lambda b, qi: (b, 0, 0), kv_bytes),
        _kv_spec((1, Sk, d_proj), lambda b, qi: (b, 0, 0), kv_bytes),
    ]
    return _sdpa_call((q_p, k_p, v_p), in_specs, B=B, Sq=Sq, Sk=Sk, d_proj=d_proj,
                      num_heads=num_heads, tq=tq, attn_dtype=attn_dtype)


# ----------------------------------------------------------------------------
# Parameters
# ----------------------------------------------------------------------------
def init_params(key, d_input, num_heads):
    """Raw f32 weights, mirroring torch.nn.Linear default init."""
    d_k = d_input // num_heads
    d_proj = num_heads * d_k
    keys = jax.random.split(key, 8)

    def linear_init(kw, kb, fan_in, fan_out):
        bound = 1.0 / jnp.sqrt(jnp.float32(fan_in))
        w = jax.random.uniform(kw, (fan_in, fan_out), jnp.float32, -bound, bound)
        b = jax.random.uniform(kb, (fan_out,), jnp.float32, -bound, bound)
        return w, b

    wq, bq = linear_init(keys[0], keys[1], d_input, d_proj)
    wk, bk = linear_init(keys[2], keys[3], d_input, d_proj)
    wv, bv = linear_init(keys[4], keys[5], d_input, d_proj)
    wo, bo = linear_init(keys[6], keys[7], d_proj, d_input)
    return dict(wq=wq, bq=bq, wk=wk, bk=bk, wv=wv, bv=bv, wo=wo, bo=bo)


def prepare_params(raw, d_input, num_heads):
    """One-time fold: stack W_Q|W_K|W_V (bf16), fold 1/sqrt(d_k) into the Q slab,
    keep biases f32 (added into the f32 accumulator)."""
    d_k = d_input // num_heads
    scale = float(d_k) ** -0.5
    w_qkv = jnp.stack([raw["wq"] * scale, raw["wk"], raw["wv"]]).astype(jnp.bfloat16)
    b_qkv = jnp.stack([raw["bq"] * scale, raw["bk"], raw["bv"]])[:, None, :]
    return dict(w_qkv=w_qkv, b_qkv=b_qkv.astype(jnp.float32),
                wo=raw["wo"].astype(jnp.bfloat16), bo=raw["bo"])


# ----------------------------------------------------------------------------
# MultiHeadAttention forward
# ----------------------------------------------------------------------------
@functools.partial(jax.jit, static_argnames=("num_heads", "attn_dtype"))
def multi_head_attention(Q, K, V, params, *, num_heads, attn_dtype=jnp.bfloat16):
    B, Sq, D = Q.shape
    Sk = K.shape[1]
    d_proj = params["w_qkv"].shape[-1]

    if Sq == Sk:
        # Fused Q/K/V projection -> packed bf16 (3, B, S, d_proj); the SDPA
        # reads the packed buffer directly (no XLA slices / extra round trips).
        qkv = qkv_project(Q.reshape(B * Sq, D), K.reshape(B * Sk, D),
                          V.reshape(B * Sk, D), params["w_qkv"], params["b_qkv"])
        qkv = qkv.reshape(3, B, Sq, d_proj)
        ctx, attn = sdpa_packed(qkv, num_heads=num_heads, attn_dtype=attn_dtype)
    else:
        # TODO(synk): cross-attention (Sq != Sk) uses the unfused projections.
        q_p = linear(Q.reshape(B * Sq, D), params["w_qkv"][0],
                     params["b_qkv"][0, 0], out_dtype=jnp.bfloat16).reshape(B, Sq, d_proj)
        k_p = linear(K.reshape(B * Sk, D), params["w_qkv"][1],
                     params["b_qkv"][1, 0], out_dtype=jnp.bfloat16).reshape(B, Sk, d_proj)
        v_p = linear(V.reshape(B * Sk, D), params["w_qkv"][2],
                     params["b_qkv"][2, 0], out_dtype=jnp.bfloat16).reshape(B, Sk, d_proj)
        ctx, attn = sdpa_separate(q_p, k_p, v_p, num_heads=num_heads,
                                  attn_dtype=attn_dtype)

    # Output projection (ctx already in "concat heads" lane-dense layout).
    out = linear(ctx.reshape(B * Sq, d_proj), params["wo"], params["bo"],
                 out_dtype=jnp.float32).reshape(B, Sq, D)
    # dropout=0.0 in this setup -> identity (matches eval / p=0 behavior).
    return out, attn


# ----------------------------------------------------------------------------
if __name__ == "__main__":
    B, S, D, H = 2, 8, 32, 4   # batch, seq, d_input, num_heads  (d_k = 8)

    key = jax.random.PRNGKey(0)
    kq, kk_, kv_, kp = jax.random.split(key, 4)
    Q = jax.random.normal(kq, (B, S, D), jnp.float32)
    K = jax.random.normal(kk_, (B, S, D), jnp.float32)
    V = jax.random.normal(kv_, (B, S, D), jnp.float32)

    raw = init_params(kp, D, H)
    params = prepare_params(raw, D, H)

    out, attn = multi_head_attention(Q, K, V, params, num_heads=H)
    jax.block_until_ready((out, attn))

    # Pure-JAX f32 reference (kernels use bf16 MXU operands, bf16 intermediate
    # storage and an approx reciprocal, so tolerances are relaxed accordingly).
    def ref(Q, K, V, p):
        d_k = D // H
        qp = (Q @ p["wq"] + p["bq"]).reshape(B, S, H, d_k).transpose(0, 2, 1, 3)
        kp2 = (K @ p["wk"] + p["bk"]).reshape(B, S, H, d_k).transpose(0, 2, 1, 3)
        vp = (V @ p["wv"] + p["bv"]).reshape(B, S, H, d_k).transpose(0, 2, 1, 3)
        s = jnp.einsum("bhqd,bhkd->bhqk", qp, kp2) / jnp.sqrt(jnp.float32(d_k))
        a = jax.nn.softmax(s, axis=-1)
        c = jnp.einsum("bhqk,bhkd->bhqd", a, vp).transpose(0, 2, 1, 3).reshape(B, S, H * d_k)
        return c @ p["wo"] + p["bo"], a

    out_ref, attn_ref = ref(Q, K, V, raw)
    attn_f32 = attn.astype(jnp.float32)

    assert out.shape == (B, S, D) and attn.shape == (B, H, S, S)
    assert jnp.allclose(attn_f32, attn_ref, atol=2e-2, rtol=2e-2), \
        float(jnp.max(jnp.abs(attn_f32 - attn_ref)))
    assert jnp.allclose(out, out_ref, atol=3e-2, rtol=3e-2), \
        float(jnp.max(jnp.abs(out - out_ref)))

    print("KERNEL_OK")
</pallas_src>

<mosaic_0001>
module attributes {stable_mosaic.version = 11 : i64} {
  func.func @_linear_kernel(%arg0: i32, %arg1: i32, %arg2: i32, %arg3: memref<16x32xbf16, #tpu.memory_space<vmem>>, %arg4: memref<32x32xbf16, #tpu.memory_space<vmem>>, %arg5: memref<1x32xf32, #tpu.memory_space<vmem>>, %arg6: memref<16x32xf32, #tpu.memory_space<vmem>>, %arg7: memref<16x32xf32, #tpu.memory_space<vmem>>) attributes {dimension_semantics = [#tpu.dimension_semantics<parallel>, #tpu.dimension_semantics<parallel>, #tpu.dimension_semantics<arbitrary>], iteration_bounds = array<i64: 1, 1, 1>, scalar_prefetch = 0 : i64, scratch_operands = 1 : i64, tpu.core_type = #tpu.core_type<tc>, window_params = [{transform_indices = @transform_0, window_bounds = array<i64: 16, 32>}, {transform_indices = @transform_1, window_bounds = array<i64: 32, 32>}, {transform_indices = @transform_2, window_bounds = array<i64: 1, 32>}, {transform_indices = @transform_3, window_bounds = array<i64: 16, 32>}]} {
    %c0_i32 = arith.constant 0 : i32
    %0 = arith.cmpi eq, %arg2, %c0_i32 : i32
    %1 = arith.extui %0 : i1 to i32
    %c0_i32_0 = arith.constant 0 : i32
    %2 = arith.cmpi ne, %1, %c0_i32_0 : i32
    scf.if %2 {
      %cst_10 = arith.constant 0.000000e+00 : f32
      %12 = vector.broadcast %cst_10 : f32 to vector<16x32xf32>
      %c0_11 = arith.constant 0 : index
      %c0_12 = arith.constant 0 : index
      %13 = vector.load %arg7[%c0_11, %c0_12] : memref<16x32xf32, #tpu.memory_space<vmem>>, vector<16x32xf32>
      tpu.vector_store %arg7[%c0_11, %c0_12], %12 {strides = array<i32>} : memref<16x32xf32, #tpu.memory_space<vmem>>, vector<16x32xf32>,
    } else {
    }
    %c0 = arith.constant 0 : index
    %c0_1 = arith.constant 0 : index
    %3 = vector.load %arg7[%c0, %c0_1] : memref<16x32xf32, #tpu.memory_space<vmem>>, vector<16x32xf32>
    %c0_2 = arith.constant 0 : index
    %c0_3 = arith.constant 0 : index
    %4 = vector.load %arg3[%c0_2, %c0_3] : memref<16x32xbf16, #tpu.memory_space<vmem>>, vector<16x32xbf16>
    %c0_4 = arith.constant 0 : index
    %c0_5 = arith.constant 0 : index
    %5 = vector.load %arg4[%c0_4, %c0_5] : memref<32x32xbf16, #tpu.memory_space<vmem>>, vector<32x32xbf16>
    %cst = arith.constant dense<0.000000e+00> : vector<16x32xf32>
    %6 = tpu.matmul %4, %5, %cst {dimension_numbers = #tpu.dot_dimension_numbers<[1], [0], [0], [1], [0, 0, 1, 1], [], []>} : vector<16x32xbf16>, vector<32x32xbf16>, vector<16x32xf32> -> vector<16x32xf32>
    %7 = arith.addf %3, %6 : vector<16x32xf32>
    %c0_6 = arith.constant 0 : index
    %c0_7 = arith.constant 0 : index
    %8 = vector.load %arg7[%c0_6, %c0_7] : memref<16x32xf32, #tpu.memory_space<vmem>>, vector<16x32xf32>
    tpu.vector_store %arg7[%c0_6, %c0_7], %7 {strides = array<i32>} : memref<16x32xf32, #tpu.memory_space<vmem>>, vector<16x32xf32>,
    %c0_i32_8 = arith.constant 0 : i32
    %9 = arith.cmpi eq, %arg2, %c0_i32_8 : i32
    %10 = arith.extui %9 : i1 to i32
    %c0_i32_9 = arith.constant 0 : i32
    %11 = arith.cmpi ne, %10, %c0_i32_9 : i32
    scf.if %11 {
      %c0_10 = arith.constant 0 : index
      %c0_11 = arith.constant 0 : index
      %12 = vector.load %arg7[%c0_10, %c0_11] : memref<16x32xf32, #tpu.memory_space<vmem>>, vector<16x32xf32>
      %c0_12 = arith.constant 0 : index
      %c0_13 = arith.constant 0 : index
      %13 = vector.load %arg5[%c0_12, %c0_13] : memref<1x32xf32, #tpu.memory_space<vmem>>, vector<1x32xf32>
      %14 = vector.broadcast %13 : vector<1x32xf32> to vector<16x32xf32>
      %15 = arith.addf %12, %14 : vector<16x32xf32>
      %c0_14 = arith.constant 0 : index
      %c0_15 = arith.constant 0 : index
      %16 = vector.load %arg6[%c0_14, %c0_15] : memref<16x32xf32, #tpu.memory_space<vmem>>, vector<16x32xf32>
      tpu.vector_store %arg6[%c0_14, %c0_15], %15 {strides = array<i32>} : memref<16x32xf32, #tpu.memory_space<vmem>>, vector<16x32xf32>,
    } else {
    }
    return
  }
  func.func @transform_0(%arg0: i32, %arg1: i32, %arg2: i32) -> (i32, i32) {
    %c0_i32 = arith.constant 0 : i32
    return %arg0, %arg2 : i32, i32
  }
  func.func @transform_1(%arg0: i32, %arg1: i32, %arg2: i32) -> (i32, i32) {
    %c0_i32 = arith.constant 0 : i32
    return %arg2, %arg1 : i32, i32
  }
  func.func @transform_2(%arg0: i32, %arg1: i32, %arg2: i32) -> (i32, i32) {
    %c0_i32 = arith.constant 0 : i32
    %c0_i32_0 = arith.constant 0 : i32
    return %c0_i32, %arg1 : i32, i32
  }
  func.func @transform_3(%arg0: i32, %arg1: i32, %arg2: i32) -> (i32, i32) {
    %c0_i32 = arith.constant 0 : i32
    return %arg0, %arg1 : i32, i32
  }
}

module attributes {stable_mosaic.version = 11 : i64} {
  func.func @_qkv_kernel(%arg0: i32, %arg1: i32, %arg2: i32, %arg3: i32, %arg4: memref<16x32xf32, #tpu.memory_space<vmem>>, %arg5: memref<16x32xf32, #tpu.memory_space<vmem>>, %arg6: memref<16x32xf32, #tpu.memory_space<vmem>>, %arg7: memref<1x32x32xbf16, #tpu.memory_space<vmem>>, %arg8: memref<1x1x32xf32, #tpu.memory_space<vmem>>, %arg9: memref<1x16x32xbf16, #tpu.memory_space<vmem>>, %arg10: memref<16x32xf32, #tpu.memory_space<vmem>>) attributes {dimension_semantics = [#tpu.dimension_semantics<parallel>, #tpu.dimension_semantics<parallel>, #tpu.dimension_semantics<arbitrary>, #tpu.dimension_semantics<arbitrary>], iteration_bounds = array<i64: 1, 1, 3, 1>, scalar_prefetch = 0 : i64, scratch_operands = 1 : i64, tpu.core_type = #tpu.core_type<tc>, window_params = [{transform_indices = @transform_0, window_bounds = array<i64: 16, 32>}, {transform_indices = @transform_1, window_bounds = array<i64: 16, 32>}, {transform_indices = @transform_2, window_bounds = array<i64: 16, 32>}, {transform_indices = @transform_3, window_bounds = array<i64: 1, 32, 32>}, {transform_indices = @transform_4, window_bounds = array<i64: 1, 1, 32>}, {transform_indices = @transform_5, window_bounds = array<i64: 1, 16, 32>}]} {
    %c0_i32 = arith.constant 0 : i32
    %0 = arith.cmpi eq, %arg3, %c0_i32 : i32
    %1 = arith.extui %0 : i1 to i32
    %c0_i32_0 = arith.constant 0 : i32
    %2 = arith.cmpi ne, %1, %c0_i32_0 : i32
    scf.if %2 {
      %cst = arith.constant 0.000000e+00 : f32
      %17 = vector.broadcast %cst : f32 to vector<16x32xf32>
      %c0_9 = arith.constant 0 : index
      %c0_10 = arith.constant 0 : index
      %18 = vector.load %arg10[%c0_9, %c0_10] : memref<16x32xf32, #tpu.memory_space<vmem>>, vector<16x32xf32>
      tpu.vector_store %arg10[%c0_9, %c0_10], %17 {strides = array<i32>} : memref<16x32xf32, #tpu.memory_space<vmem>>, vector<16x32xf32>,
    } else {
    }
    %c0 = arith.constant 0 : index
    %c0_1 = arith.constant 0 : index
    %c0_2 = arith.constant 0 : index
    %3 = vector.load %arg7[%c0, %c0_1, %c0_2] : memref<1x32x32xbf16, #tpu.memory_space<vmem>>, vector<1x32x32xbf16>
    %4 = vector.shape_cast %3 : vector<1x32x32xbf16> to vector<32x32xbf16>
    %c0_i32_3 = arith.constant 0 : i32
    %5 = arith.cmpi eq, %arg2, %c0_i32_3 : i32
    %6 = arith.extui %5 : i1 to i32
    %c0_i32_4 = arith.constant 0 : i32
    %7 = arith.cmpi ne, %6, %c0_i32_4 : i32
    scf.if %7 {
      %c0_9 = arith.constant 0 : index
      %c0_10 = arith.constant 0 : index
      %17 = vector.load %arg10[%c0_9, %c0_10] : memref<16x32xf32, #tpu.memory_space<vmem>>, vector<16x32xf32>
      %c0_11 = arith.constant 0 : index
      %c0_12 = arith.constant 0 : index
      %18 = vector.load %arg4[%c0_11, %c0_12] : memref<16x32xf32, #tpu.memory_space<vmem>>, vector<16x32xf32>
      %19 = arith.truncf %18 : vector<16x32xf32> to vector<16x32xbf16>
      %cst = arith.constant dense<0.000000e+00> : vector<16x32xf32>
      %20 = tpu.matmul %19, %4, %cst {dimension_numbers = #tpu.dot_dimension_numbers<[1], [0], [0], [1], [0, 0, 1, 1], [], []>} : vector<16x32xbf16>, vector<32x32xbf16>, vector<16x32xf32> -> vector<16x32xf32>
      %21 = arith.addf %17, %20 : vector<16x32xf32>
      %c0_13 = arith.constant 0 : index
      %c0_14 = arith.constant 0 : index
      %22 = vector.load %arg10[%c0_13, %c0_14] : memref<16x32xf32, #tpu.memory_space<vmem>>, vector<16x32xf32>
      tpu.vector_store %arg10[%c0_13, %c0_14], %21 {strides = array<i32>} : memref<16x32xf32, #tpu.memory_space<vmem>>, vector<16x32xf32>,
    } else {
    }
    %c1_i32 = arith.constant 1 : i32
    %8 = arith.cmpi eq, %arg2, %c1_i32 : i32
    %9 = arith.extui %8 : i1 to i32
    %c0_i32_5 = arith.constant 0 : i32
    %10 = arith.cmpi ne, %9, %c0_i32_5 : i32
    scf.if %10 {
      %c0_9 = arith.constant 0 : index
      %c0_10 = arith.constant 0 : index
      %17 = vector.load %arg10[%c0_9, %c0_10] : memref<16x32xf32, #tpu.memory_space<vmem>>, vector<16x32xf32>
      %c0_11 = arith.constant 0 : index
      %c0_12 = arith.constant 0 : index
      %18 = vector.load %arg5[%c0_11, %c0_12] : memref<16x32xf32, #tpu.memory_space<vmem>>, vector<16x32xf32>
      %19 = arith.truncf %18 : vector<16x32xf32> to vector<16x32xbf16>
      %cst = arith.constant dense<0.000000e+00> : vector<16x32xf32>
      %20 = tpu.matmul %19, %4, %cst {dimension_numbers = #tpu.dot_dimension_numbers<[1], [0], [0], [1], [0, 0, 1, 1], [], []>} : vector<16x32xbf16>, vector<32x32xbf16>, vector<16x32xf32> -> vector<16x32xf32>
      %21 = arith.addf %17, %20 : vector<16x32xf32>
      %c0_13 = arith.constant 0 : index
      %c0_14 = arith.constant 0 : index
      %22 = vector.load %arg10[%c0_13, %c0_14] : memref<16x32xf32, #tpu.memory_space<vmem>>, vector<16x32xf32>
      tpu.vector_store %arg10[%c0_13, %c0_14], %21 {strides = array<i32>} : memref<16x32xf32, #tpu.memory_space<vmem>>, vector<16x32xf32>,
    } else {
    }
    %c2_i32 = arith.constant 2 : i32
    %11 = arith.cmpi eq, %arg2, %c2_i32 : i32
    %12 = arith.extui %11 : i1 to i32
    %c0_i32_6 = arith.constant 0 : i32
    %13 = arith.cmpi ne, %12, %c0_i32_6 : i32
    scf.if %13 {
      %c0_9 = arith.constant 0 : index
      %c0_10 = arith.constant 0 : index
      %17 = vector.load %arg10[%c0_9, %c0_10] : memref<16x32xf32, #tpu.memory_space<vmem>>, vector<16x32xf32>
      %c0_11 = arith.constant 0 : index
      %c0_12 = arith.constant 0 : index
      %18 = vector.load %arg6[%c0_11, %c0_12] : memref<16x32xf32, #tpu.memory_space<vmem>>, vector<16x32xf32>
      %19 = arith.truncf %18 : vector<16x32xf32> to vector<16x32xbf16>
      %cst = arith.constant dense<0.000000e+00> : vector<16x32xf32>
      %20 = tpu.matmul %19, %4, %cst {dimension_numbers = #tpu.dot_dimension_numbers<[1], [0], [0], [1], [0, 0, 1, 1], [], []>} : vector<16x32xbf16>, vector<32x32xbf16>, vector<16x32xf32> -> vector<16x32xf32>
      %21 = arith.addf %17, %20 : vector<16x32xf32>
      %c0_13 = arith.constant 0 : index
      %c0_14 = arith.constant 0 : index
      %22 = vector.load %arg10[%c0_13, %c0_14] : memref<16x32xf32, #tpu.memory_space<vmem>>, vector<16x32xf32>
      tpu.vector_store %arg10[%c0_13, %c0_14], %21 {strides = array<i32>} : memref<16x32xf32, #tpu.memory_space<vmem>>, vector<16x32xf32>,
    } else {
    }
    %c0_i32_7 = arith.constant 0 : i32
    %14 = arith.cmpi eq, %arg3, %c0_i32_7 : i32
    %15 = arith.extui %14 : i1 to i32
    %c0_i32_8 = arith.constant 0 : i32
    %16 = arith.cmpi ne, %15, %c0_i32_8 : i32
    scf.if %16 {
      %c0_9 = arith.constant 0 : index
      %c0_10 = arith.constant 0 : index
      %17 = vector.load %arg10[%c0_9, %c0_10] : memref<16x32xf32, #tpu.memory_space<vmem>>, vector<16x32xf32>
      %c0_11 = arith.constant 0 : index
      %c0_12 = arith.constant 0 : index
      %c0_13 = arith.constant 0 : index
      %18 = vector.load %arg8[%c0_11, %c0_12, %c0_13] : memref<1x1x32xf32, #tpu.memory_space<vmem>>, vector<1x1x32xf32>
      %19 = vector.shape_cast %18 : vector<1x1x32xf32> to vector<1x32xf32>
      %20 = vector.broadcast %19 : vector<1x32xf32> to vector<16x32xf32>
      %21 = arith.addf %17, %20 : vector<16x32xf32>
      %22 = arith.truncf %21 : vector<16x32xf32> to vector<16x32xbf16>
      %c0_14 = arith.constant 0 : index
      %c0_15 = arith.constant 0 : index
      %c0_16 = arith.constant 0 : index
      %23 = vector.load %arg9[%c0_14, %c0_15, %c0_16] : memref<1x16x32xbf16, #tpu.memory_space<vmem>>, vector<1x16x32xbf16>
      %24 = vector.shape_cast %23 : vector<1x16x32xbf16> to vector<16x32xbf16>
      %25 = vector.shape_cast %22 : vector<16x32xbf16> to vector<1x16x32xbf16>
      tpu.vector_store %arg9[%c0_14, %c0_15, %c0_16], %25 {strides = array<i32>} : memref<1x16x32xbf16, #tpu.memory_space<vmem>>, vector<1x16x32xbf16>,
    } else {
    }
    return
  }
  func.func @transform_0(%arg0: i32, %arg1: i32, %arg2: i32, %arg3: i32) -> (i32, i32) {
    %c0_i32 = arith.constant 0 : i32
    %0 = arith.cmpi eq, %arg2, %c0_i32 : i32
    %c0_i32_0 = arith.constant 0 : i32
    %1 = arith.select %0, %arg3, %c0_i32_0 : i32
    %c0_i32_1 = arith.constant 0 : i32
    return %arg0, %1 : i32, i32
  }
  func.func @transform_1(%arg0: i32, %arg1: i32, %arg2: i32, %arg3: i32) -> (i32, i32) {
    %c1_i32 = arith.constant 1 : i32
    %0 = arith.cmpi eq, %arg2, %c1_i32 : i32
    %c0_i32 = arith.constant 0 : i32
    %1 = arith.cmpi eq, %arg2, %c0_i32 : i32
    %c0_i32_0 = arith.constant 0 : i32
    %c0_i32_1 = arith.constant 0 : i32
    %2 = arith.select %1, %c0_i32_0, %c0_i32_1 : i32
    %3 = arith.select %0, %arg3, %2 : i32
    %c0_i32_2 = arith.constant 0 : i32
    return %arg0, %3 : i32, i32
  }
  func.func @transform_2(%arg0: i32, %arg1: i32, %arg2: i32, %arg3: i32) -> (i32, i32) {
    %c2_i32 = arith.constant 2 : i32
    %0 = arith.cmpi eq, %arg2, %c2_i32 : i32
    %c0_i32 = arith.constant 0 : i32
    %1 = arith.select %0, %arg3, %c0_i32 : i32
    %c0_i32_0 = arith.constant 0 : i32
    return %arg0, %1 : i32, i32
  }
  func.func @transform_3(%arg0: i32, %arg1: i32, %arg2: i32, %arg3: i32) -> (i32, i32, i32) {
    %c0_i32 = arith.constant 0 : i32
    return %arg2, %arg3, %arg1 : i32, i32, i32
  }
  func.func @transform_4(%arg0: i32, %arg1: i32, %arg2: i32, %arg3: i32) -> (i32, i32, i32) {
    %c0_i32 = arith.constant 0 : i32
    %c0_i32_0 = arith.constant 0 : i32
    return %arg2, %c0_i32, %arg1 : i32, i32, i32
  }
  func.func @transform_5(%arg0: i32, %arg1: i32, %arg2: i32, %arg3: i32) -> (i32, i32, i32) {
    %c0_i32 = arith.constant 0 : i32
    return %arg2, %arg0, %arg1 : i32, i32, i32
  }
}

module attributes {stable_mosaic.version = 11 : i64} {
  func.func @_sdpa_kernel(%arg0: i32, %arg1: i32, %arg2: memref<1x1x8x32xbf16, #tpu.memory_space<vmem>>, %arg3: memref<1x1x8x32xbf16, #tpu.memory_space<vmem>>, %arg4: memref<1x1x8x32xbf16, #tpu.memory_space<vmem>>, %arg5: memref<1x8x32xbf16, #tpu.memory_space<vmem>>, %arg6: memref<1x4x8x8xbf16, #tpu.memory_space<vmem>>) attributes {dimension_semantics = [#tpu.dimension_semantics<parallel>, #tpu.dimension_semantics<parallel>], iteration_bounds = array<i64: 2, 1>, scalar_prefetch = 0 : i64, scratch_operands = 0 : i64, tpu.core_type = #tpu.core_type<tc>, window_params = [{transform_indices = @transform_0, window_bounds = array<i64: 1, 1, 8, 32>}, {transform_indices = @transform_1, window_bounds = array<i64: 1, 1, 8, 32>}, {transform_indices = @transform_2, window_bounds = array<i64: 1, 1, 8, 32>}, {transform_indices = @transform_3, window_bounds = array<i64: 1, 8, 32>}, {transform_indices = @transform_4, window_bounds = array<i64: 1, 4, 8, 8>}]} {
    %c0 = arith.constant 0 : index
    %c0_0 = arith.constant 0 : index
    %c0_1 = arith.constant 0 : index
    %c0_2 = arith.constant 0 : index
    %0 = vector.load %arg2[%c0, %c0_0, %c0_1, %c0_2] : memref<1x1x8x32xbf16, #tpu.memory_space<vmem>>, vector<1x1x8x32xbf16>
    %1 = vector.shape_cast %0 : vector<1x1x8x32xbf16> to vector<8x32xbf16>
    %c0_3 = arith.constant 0 : index
    %c0_4 = arith.constant 0 : index
    %c0_5 = arith.constant 0 : index
    %c0_6 = arith.constant 0 : index
    %2 = vector.load %arg3[%c0_3, %c0_4, %c0_5, %c0_6] : memref<1x1x8x32xbf16, #tpu.memory_space<vmem>>, vector<1x1x8x32xbf16>
    %3 = vector.shape_cast %2 : vector<1x1x8x32xbf16> to vector<8x32xbf16>
    %c0_7 = arith.constant 0 : index
    %c0_8 = arith.constant 0 : index
    %c0_9 = arith.constant 0 : index
    %c0_10 = arith.constant 0 : index
    %4 = vector.load %arg4[%c0_7, %c0_8, %c0_9, %c0_10] : memref<1x1x8x32xbf16, #tpu.memory_space<vmem>>, vector<1x1x8x32xbf16>
    %5 = vector.shape_cast %4 : vector<1x1x8x32xbf16> to vector<8x32xbf16>
    %6 = vector.extract_strided_slice %1 {offsets = [0, 0], sizes = [8, 8], strides = [1, 1]} : vector<8x32xbf16> to vector<8x8xbf16>
    %7 = vector.extract_strided_slice %3 {offsets = [0, 0], sizes = [8, 8], strides = [1, 1]} : vector<8x32xbf16> to vector<8x8xbf16>
    %cst = arith.constant dense<0.000000e+00> : vector<8x8xf32>
    %8 = tpu.matmul %6, %7, %cst {dimension_numbers = #tpu.dot_dimension_numbers<[1], [1], [0], [0], [0, 0, 1, 0], [], []>} : vector<8x8xbf16>, vector<8x8xbf16>, vector<8x8xf32> -> vector<8x8xf32>
    %cst_11 = arith.constant dense<0xFF800000> : vector<8xf32>
    %9 = vector.multi_reduction <maximumf>, %8, %cst_11 [1] : vector<8x8xf32> to vector<8xf32>
    %10 = vector.shape_cast %9 : vector<8xf32> to vector<8x1xf32>
    %11 = vector.broadcast %10 : vector<8x1xf32> to vector<8x8xf32>
    %12 = arith.subf %8, %11 : vector<8x8xf32>
    %13 = math.exp %12 : vector<8x8xf32>
    %cst_12 = arith.constant dense<0.000000e+00> : vector<8xf32>
    %14 = vector.multi_reduction <add>, %13, %cst_12 [1] : vector<8x8xf32> to vector<8xf32>
    %15 = vector.shape_cast %14 : vector<8xf32> to vector<8x1xf32>
    %16 = tpu.reciprocal %15 {approx = true} : vector<8x1xf32> -> vector<8x1xf32>
    %17 = vector.broadcast %16 : vector<8x1xf32> to vector<8x8xf32>
    %18 = arith.mulf %13, %17 : vector<8x8xf32>
    %19 = arith.truncf %18 : vector<8x8xf32> to vector<8x8xbf16>
    %c0_13 = arith.constant 0 : index
    %c0_14 = arith.constant 0 : index
    %c0_15 = arith.constant 0 : index
    %c0_16 = arith.constant 0 : index
    %20 = vector.load %arg6[%c0_13, %c0_14, %c0_15, %c0_16] : memref<1x4x8x8xbf16, #tpu.memory_space<vmem>>, vector<1x1x8x8xbf16>
    %21 = vector.shape_cast %20 : vector<1x1x8x8xbf16> to vector<8x8xbf16>
    %22 = vector.shape_cast %19 : vector<8x8xbf16> to vector<1x1x8x8xbf16>
    tpu.vector_store %arg6[%c0_13, %c0_14, %c0_15, %c0_16], %22 {strides = array<i32>} : memref<1x4x8x8xbf16, #tpu.memory_space<vmem>>, vector<1x1x8x8xbf16>,
    %23 = arith.truncf %18 : vector<8x8xf32> to vector<8x8xbf16>
    %24 = vector.extract_strided_slice %5 {offsets = [0, 0], sizes = [8, 8], strides = [1, 1]} : vector<8x32xbf16> to vector<8x8xbf16>
    %cst_17 = arith.constant dense<0.000000e+00> : vector<8x8xf32>
    %25 = tpu.matmul %23, %24, %cst_17 {dimension_numbers = #tpu.dot_dimension_numbers<[1], [0], [0], [1], [0, 0, 1, 1], [], []>} : vector<8x8xbf16>, vector<8x8xbf16>, vector<8x8xf32> -> vector<8x8xf32>
    %26 = arith.truncf %25 : vector<8x8xf32> to vector<8x8xbf16>
    %c0_18 = arith.constant 0 : index
    %c0_19 = arith.constant 0 : index
    %c0_20 = arith.constant 0 : index
    %27 = vector.load %arg5[%c0_18, %c0_19, %c0_20] : memref<1x8x32xbf16, #tpu.memory_space<vmem>>, vector<1x8x8xbf16>
    %28 = vector.shape_cast %27 : vector<1x8x8xbf16> to vector<8x8xbf16>
    %29 = vector.shape_cast %26 : vector<8x8xbf16> to vector<1x8x8xbf16>
    tpu.vector_store %arg5[%c0_18, %c0_19, %c0_20], %29 {strides = array<i32>} : memref<1x8x32xbf16, #tpu.memory_space<vmem>>, vector<1x8x8xbf16>,
    %30 = vector.extract_strided_slice %1 {offsets = [0, 8], sizes = [8, 8], strides = [1, 1]} : vector<8x32xbf16> to vector<8x8xbf16>
    %31 = vector.extract_strided_slice %3 {offsets = [0, 8], sizes = [8, 8], strides = [1, 1]} : vector<8x32xbf16> to vector<8x8xbf16>
    %cst_21 = arith.constant dense<0.000000e+00> : vector<8x8xf32>
    %32 = tpu.matmul %30, %31, %cst_21 {dimension_numbers = #tpu.dot_dimension_numbers<[1], [1], [0], [0], [0, 0, 1, 0], [], []>} : vector<8x8xbf16>, vector<8x8xbf16>, vector<8x8xf32> -> vector<8x8xf32>
    %cst_22 = arith.constant dense<0xFF800000> : vector<8xf32>
    %33 = vector.multi_reduction <maximumf>, %32, %cst_22 [1] : vector<8x8xf32> to vector<8xf32>
    %34 = vector.shape_cast %33 : vector<8xf32> to vector<8x1xf32>
    %35 = vector.broadcast %34 : vector<8x1xf32> to vector<8x8xf32>
    %36 = arith.subf %32, %35 : vector<8x8xf32>
    %37 = math.exp %36 : vector<8x8xf32>
    %cst_23 = arith.constant dense<0.000000e+00> : vector<8xf32>
    %38 = vector.multi_reduction <add>, %37, %cst_23 [1] : vector<8x8xf32> to vector<8xf32>
    %39 = vector.shape_cast %38 : vector<8xf32> to vector<8x1xf32>
    %40 = tpu.reciprocal %39 {approx = true} : vector<8x1xf32> -> vector<8x1xf32>
    %41 = vector.broadcast %40 : vector<8x1xf32> to vector<8x8xf32>
    %42 = arith.mulf %37, %41 : vector<8x8xf32>
    %43 = arith.truncf %42 : vector<8x8xf32> to vector<8x8xbf16>
    %c0_24 = arith.constant 0 : index
    %c1 = arith.constant 1 : index
    %c0_25 = arith.constant 0 : index
    %c0_26 = arith.constant 0 : index
    %44 = vector.load %arg6[%c0_24, %c1, %c0_25, %c0_26] : memref<1x4x8x8xbf16, #tpu.memory_space<vmem>>, vector<1x1x8x8xbf16>
    %45 = vector.shape_cast %44 : vector<1x1x8x8xbf16> to vector<8x8xbf16>
    %46 = vector.shape_cast %43 : vector<8x8xbf16> to vector<1x1x8x8xbf16>
    tpu.vector_store %arg6[%c0_24, %c1, %c0_25, %c0_26], %46 {strides = array<i32>} : memref<1x4x8x8xbf16, #tpu.memory_space<vmem>>, vector<1x1x8x8xbf16>,
    %47 = arith.truncf %42 : vector<8x8xf32> to vector<8x8xbf16>
    %48 = vector.extract_strided_slice %5 {offsets = [0, 8], sizes = [8, 8], strides = [1, 1]} : vector<8x32xbf16> to vector<8x8xbf16>
    %cst_27 = arith.constant dense<0.000000e+00> : vector<8x8xf32>
    %49 = tpu.matmul %47, %48, %cst_27 {dimension_numbers = #tpu.dot_dimension_numbers<[1], [0], [0], [1], [0, 0, 1, 1], [], []>} : vector<8x8xbf16>, vector<8x8xbf16>, vector<8x8xf32> -> vector<8x8xf32>
    %50 = arith.truncf %49 : vector<8x8xf32> to vector<8x8xbf16>
    %c0_28 = arith.constant 0 : index
    %c0_29 = arith.constant 0 : index
    %c8 = arith.constant 8 : index
    %51 = vector.load %arg5[%c0_28, %c0_29, %c8] : memref<1x8x32xbf16, #tpu.memory_space<vmem>>, vector<1x8x8xbf16>
    %52 = vector.shape_cast %51 : vector<1x8x8xbf16> to vector<8x8xbf16>
    %53 = vector.shape_cast %50 : vector<8x8xbf16> to vector<1x8x8xbf16>
    tpu.vector_store %arg5[%c0_28, %c0_29, %c8], %53 {strides = array<i32>} : memref<1x8x32xbf16, #tpu.memory_space<vmem>>, vector<1x8x8xbf16>,
    %54 = vector.extract_strided_slice %1 {offsets = [0, 16], sizes = [8, 8], strides = [1, 1]} : vector<8x32xbf16> to vector<8x8xbf16>
    %55 = vector.extract_strided_slice %3 {offsets = [0, 16], sizes = [8, 8], strides = [1, 1]} : vector<8x32xbf16> to vector<8x8xbf16>
    %cst_30 = arith.constant dense<0.000000e+00> : vector<8x8xf32>
    %56 = tpu.matmul %54, %55, %cst_30 {dimension_numbers = #tpu.dot_dimension_numbers<[1], [1], [0], [0], [0, 0, 1, 0], [], []>} : vector<8x8xbf16>, vector<8x8xbf16>, vector<8x8xf32> -> vector<8x8xf32>
    %cst_31 = arith.constant dense<0xFF800000> : vector<8xf32>
    %57 = vector.multi_reduction <maximumf>, %56, %cst_31 [1] : vector<8x8xf32> to vector<8xf32>
    %58 = vector.shape_cast %57 : vector<8xf32> to vector<8x1xf32>
    %59 = vector.broadcast %58 : vector<8x1xf32> to vector<8x8xf32>
    %60 = arith.subf %56, %59 : vector<8x8xf32>
    %61 = math.exp %60 : vector<8x8xf32>
    %cst_32 = arith.constant dense<0.000000e+00> : vector<8xf32>
    %62 = vector.multi_reduction <add>, %61, %cst_32 [1] : vector<8x8xf32> to vector<8xf32>
    %63 = vector.shape_cast %62 : vector<8xf32> to vector<8x1xf32>
    %64 = tpu.reciprocal %63 {approx = true} : vector<8x1xf32> -> vector<8x1xf32>
    %65 = vector.broadcast %64 : vector<8x1xf32> to vector<8x8xf32>
    %66 = arith.mulf %61, %65 : vector<8x8xf32>
    %67 = arith.truncf %66 : vector<8x8xf32> to vector<8x8xbf16>
    %c0_33 = arith.constant 0 : index
    %c2 = arith.constant 2 : index
    %c0_34 = arith.constant 0 : index
    %c0_35 = arith.constant 0 : index
    %68 = vector.load %arg6[%c0_33, %c2, %c0_34, %c0_35] : memref<1x4x8x8xbf16, #tpu.memory_space<vmem>>, vector<1x1x8x8xbf16>
    %69 = vector.shape_cast %68 : vector<1x1x8x8xbf16> to vector<8x8xbf16>
    %70 = vector.shape_cast %67 : vector<8x8xbf16> to vector<1x1x8x8xbf16>
    tpu.vector_store %arg6[%c0_33, %c2, %c0_34, %c0_35], %70 {strides = array<i32>} : memref<1x4x8x8xbf16, #tpu.memory_space<vmem>>, vector<1x1x8x8xbf16>,
    %71 = arith.truncf %66 : vector<8x8xf32> to vector<8x8xbf16>
    %72 = vector.extract_strided_slice %5 {offsets = [0, 16], sizes = [8, 8], strides = [1, 1]} : vector<8x32xbf16> to vector<8x8xbf16>
    %cst_36 = arith.constant dense<0.000000e+00> : vector<8x8xf32>
    %73 = tpu.matmul %71, %72, %cst_36 {dimension_numbers = #tpu.dot_dimension_numbers<[1], [0], [0], [1], [0, 0, 1, 1], [], []>} : vector<8x8xbf16>, vector<8x8xbf16>, vector<8x8xf32> -> vector<8x8xf32>
    %74 = arith.truncf %73 : vector<8x8xf32> to vector<8x8xbf16>
    %c0_37 = arith.constant 0 : index
    %c0_38 = arith.constant 0 : index
    %c16 = arith.constant 16 : index
    %75 = vector.load %arg5[%c0_37, %c0_38, %c16] : memref<1x8x32xbf16, #tpu.memory_space<vmem>>, vector<1x8x8xbf16>
    %76 = vector.shape_cast %75 : vector<1x8x8xbf16> to vector<8x8xbf16>
    %77 = vector.shape_cast %74 : vector<8x8xbf16> to vector<1x8x8xbf16>
    tpu.vector_store %arg5[%c0_37, %c0_38, %c16], %77 {strides = array<i32>} : memref<1x8x32xbf16, #tpu.memory_space<vmem>>, vector<1x8x8xbf16>,
    %78 = vector.extract_strided_slice %1 {offsets = [0, 24], sizes = [8, 8], strides = [1, 1]} : vector<8x32xbf16> to vector<8x8xbf16>
    %79 = vector.extract_strided_slice %3 {offsets = [0, 24], sizes = [8, 8], strides = [1, 1]} : vector<8x32xbf16> to vector<8x8xbf16>
    %cst_39 = arith.constant dense<0.000000e+00> : vector<8x8xf32>
    %80 = tpu.matmul %78, %79, %cst_39 {dimension_numbers = #tpu.dot_dimension_numbers<[1], [1], [0], [0], [0, 0, 1, 0], [], []>} : vector<8x8xbf16>, vector<8x8xbf16>, vector<8x8xf32> -> vector<8x8xf32>
    %cst_40 = arith.constant dense<0xFF800000> : vector<8xf32>
    %81 = vector.multi_reduction <maximumf>, %80, %cst_40 [1] : vector<8x8xf32> to vector<8xf32>
    %82 = vector.shape_cast %81 : vector<8xf32> to vector<8x1xf32>
    %83 = vector.broadcast %82 : vector<8x1xf32> to vector<8x8xf32>
    %84 = arith.subf %80, %83 : vector<8x8xf32>
    %85 = math.exp %84 : vector<8x8xf32>
    %cst_41 = arith.constant dense<0.000000e+00> : vector<8xf32>
    %86 = vector.multi_reduction <add>, %85, %cst_41 [1] : vector<8x8xf32> to vector<8xf32>
    %87 = vector.shape_cast %86 : vector<8xf32> to vector<8x1xf32>
    %88 = tpu.reciprocal %87 {approx = true} : vector<8x1xf32> -> vector<8x1xf32>
    %89 = vector.broadcast %88 : vector<8x1xf32> to vector<8x8xf32>
    %90 = arith.mulf %85, %89 : vector<8x8xf32>
    %91 = arith.truncf %90 : vector<8x8xf32> to vector<8x8xbf16>
    %c0_42 = arith.constant 0 : index
    %c3 = arith.constant 3 : index
    %c0_43 = arith.constant 0 : index
    %c0_44 = arith.constant 0 : index
    %92 = vector.load %arg6[%c0_42, %c3, %c0_43, %c0_44] : memref<1x4x8x8xbf16, #tpu.memory_space<vmem>>, vector<1x1x8x8xbf16>
    %93 = vector.shape_cast %92 : vector<1x1x8x8xbf16> to vector<8x8xbf16>
    %94 = vector.shape_cast %91 : vector<8x8xbf16> to vector<1x1x8x8xbf16>
    tpu.vector_store %arg6[%c0_42, %c3, %c0_43, %c0_44], %94 {strides = array<i32>} : memref<1x4x8x8xbf16, #tpu.memory_space<vmem>>, vector<1x1x8x8xbf16>,
    %95 = arith.truncf %90 : vector<8x8xf32> to vector<8x8xbf16>
    %96 = vector.extract_strided_slice %5 {offsets = [0, 24], sizes = [8, 8], strides = [1, 1]} : vector<8x32xbf16> to vector<8x8xbf16>
    %cst_45 = arith.constant dense<0.000000e+00> : vector<8x8xf32>
    %97 = tpu.matmul %95, %96, %cst_45 {dimension_numbers = #tpu.dot_dimension_numbers<[1], [0], [0], [1], [0, 0, 1, 1], [], []>} : vector<8x8xbf16>, vector<8x8xbf16>, vector<8x8xf32> -> vector<8x8xf32>
    %98 = arith.truncf %97 : vector<8x8xf32> to vector<8x8xbf16>
    %c0_46 = arith.constant 0 : index
    %c0_47 = arith.constant 0 : index
    %c24 = arith.constant 24 : index
    %99 = vector.load %arg5[%c0_46, %c0_47, %c24] : memref<1x8x32xbf16, #tpu.memory_space<vmem>>, vector<1x8x8xbf16>
    %100 = vector.shape_cast %99 : vector<1x8x8xbf16> to vector<8x8xbf16>
    %101 = vector.shape_cast %98 : vector<8x8xbf16> to vector<1x8x8xbf16>
    tpu.vector_store %arg5[%c0_46, %c0_47, %c24], %101 {strides = array<i32>} : memref<1x8x32xbf16, #tpu.memory_space<vmem>>, vector<1x8x8xbf16>,
    return
  }
  func.func @transform_0(%arg0: i32, %arg1: i32) -> (i32, i32, i32, i32) {
    %c0_i32 = arith.constant 0 : i32
    %c0_i32_0 = arith.constant 0 : i32
    %c0_i32_1 = arith.constant 0 : i32
    return %c0_i32, %arg0, %arg1, %c0_i32_0 : i32, i32, i32, i32
  }
  func.func @transform_1(%arg0: i32, %arg1: i32) -> (i32, i32, i32, i32) {
    %c1_i32 = arith.constant 1 : i32
    %c0_i32 = arith.constant 0 : i32
    %c0_i32_0 = arith.constant 0 : i32
    %c0_i32_1 = arith.constant 0 : i32
    return %c1_i32, %arg0, %c0_i32, %c0_i32_0 : i32, i32, i32, i32
  }
  func.func @transform_2(%arg0: i32, %arg1: i32) -> (i32, i32, i32, i32) {
    %c2_i32 = arith.constant 2 : i32
    %c0_i32 = arith.constant 0 : i32
    %c0_i32_0 = arith.constant 0 : i32
    %c0_i32_1 = arith.constant 0 : i32
    return %c2_i32, %arg0, %c0_i32, %c0_i32_0 : i32, i32, i32, i32
  }
  func.func @transform_3(%arg0: i32, %arg1: i32) -> (i32, i32, i32) {
    %c0_i32 = arith.constant 0 : i32
    %c0_i32_0 = arith.constant 0 : i32
    return %arg0, %arg1, %c0_i32 : i32, i32, i32
  }
  func.func @transform_4(%arg0: i32, %arg1: i32) -> (i32, i32, i32, i32) {
    %c0_i32 = arith.constant 0 : i32
    %c0_i32_0 = arith.constant 0 : i32
    %c0_i32_1 = arith.constant 0 : i32
    return %arg0, %c0_i32, %arg1, %c0_i32_0 : i32, i32, i32, i32
  }
}

</mosaic_0001>

<bundles_post_ra>
// kernel: multi_head_attention.5
= control target key start
LH: loop header
LB: loop body
LE: loop exit
PB: predicated region body
PF: predicated region fallthrough
CT: control target
= control target key end

     0   :  { %v177_v1 = vmov 0.0   ;;  %vm178_vm0 = vmmov 0   ;;  %vm20_vm1 = vcmask 261120   ;;  %s233_s0 = inlined_call_operand.vmem [shape: bf16[16,32], index: 0, kind: input, shape index: {}]   ;;  %s234_s1 = inlined_call_operand.vmem [shape: bf16[32,32], index: 1, kind: input, shape index: {}]   ;;  %s235_s2 = inlined_call_operand.vmem [shape: f32[1,32], index: 2, kind: input, shape index: {}]   ;;  %s236_s3 = inlined_call_operand.hbm [shape: f32[16,32], index: 3, kind: output, shape index: {}]  }
   0x1   :  { %v150_v0 = vld [vmem:[%s234_s1] sm:$0xff]   ;;  %137 = vmatprep.subr.bf16.mxu0 %v177_v1  ;;  %v151_v2 = vld [vmem:[%s234_s1 + $0x8] sm:$0xff]   ;;  %141 = vmatprep.mubr.msk.bf16.mxu0 %vm178_vm0, %v177_v1  ;;  %21 = vst.msk [vmem:[#allocation2] sm:$0xff] %vm20_vm1, %v177_v1  ;;  %22 = vst.msk [vmem:[#allocation2 + $0x8] sm:$0xff] %vm20_vm1, %v177_v1 }
   0x2   :  { %138 = vmatpush3.bf16.msra.mxu0 %v150_v0 }
   0x3   :  { %139 = vmatprep.subr.bf16.mxu0 %v177_v1 }
   0x4   :  { %8 = vsyncpa [#allocation4], 0  ;;  %v152_v3 = vld [vmem:[%s233_s0] sm:$0xff]   ;;  %s179_s0 = smov [#allocation3]  }
   0x5   :  { %v133_v12 = vld [vmem:[%s235_s2] ss:$0 sm:$0xff]  ;;  %s118_s19 = sshll.u32 %s179_s0, 4  ;;  %s119_s19 = int_to_ptr.vmem [resolvable:$true] %s118_s19 }
   0x6   :  { %140 = vmatpush3.bf16.msra.mxu0 %v151_v2  ;;  %s153_s20 = scalar_lea.vmem %s119_s19, 256  ;;  %p158_p1 = scmp.lt.s32.totalorder %s119_s19, %s119_s19 }
   0x7   :  { %p154_p0 = scmp.ne.s32.totalorder %s119_s19, %s153_s20  ;;  %p159_p2 = scmp.lt.s32.totalorder %s153_s20, %s153_s20 }
   0x8   :  { %v23_v4 = vld [vmem:[#allocation2] sm:$0xff]  ;;  %v24_v6 = vld [vmem:[#allocation2 + $0x8] sm:$0xff] }
   0x9   :  { %142 = vmatmul.mubr.msk.bf16.vlgmr.msra.gmra.mrb[0].mxu0 %vm20_vm1, %v152_v3  ;;  %p160_p3 = por %p159_p2, %p158_p1 }
   0xb   :  { %p161_p4 = pnand %p160_p3, %p154_p0 }
  0xdc   :  { %v86_v5 = vpop.f32.mrb[0].mxu0 }
  0xdd   :  { %v93_v7 = vadd.f32 %v86_v5, %v23_v4  ;;  %v143_v8 = vpop.f32.mrb[1].mxu0 }
  0xde   :  { %v89_v9 = vpop.f32.mrb[2].mxu0 }
  0xdf   :  { %95 = vst.msk [vmem:[#allocation2] sm:$0xff] %vm20_vm1, %v93_v7  ;;  %v94_v10 = vadd.f32 %v89_v9, %v24_v6  ;;  %v144_v11 = vpop.f32.mrb[3].mxu0 }
  0xe1   :  { %96 = vst.msk [vmem:[#allocation2 + $0x8] sm:$0xff] %vm20_vm1, %v94_v10 }
  0xe6   :  { %v100_v13 = vld [vmem:[#allocation2] sm:$0xff] }
  0xe7   :  { %v109_v14 = vadd.f32 %v133_v12, %v100_v13 }
  0xe8   :  { %v101_v15 = vld [vmem:[#allocation2 + $0x8] sm:$0xff] }
  0xe9   :  { %v110_v16 = vadd.f32 %v133_v12, %v101_v15  ;;  %111 = vst.msk [vmem:[#allocation3] sm:$0xff] %vm20_vm1, %v109_v14 }
  0xeb   :  { %112 = vst.msk [vmem:[#allocation3 + $0x8] sm:$0xff] %vm20_vm1, %v110_v16 }
  0xec   :  { %164 = shalt.err (!%p161_p4)
}
  0xed   :  { %s165_s22 = scalar_lea.hbm %s236_s3, 256 }
  0xee   :  { %p166_p5 = scmp.ne.s32.totalorder %s236_s3, %s165_s22  ;;  %p169_p6 = scmp.lt.u32.totalorder %s165_s22, %s236_s3 }
  0xf0   :  { %p171_p7 = pnand %p169_p6, %p166_p5 }
  0xf2   :  { %174 = shalt.err (!%p171_p7)
}
  0xf3   :  { %s180_s27 = smov 128   ;;  %s181_s28 = smov 8  }
  0xf4   :  { %124 = dma.vmem_to_hbm [thread:$0]  %s119_s19, 256, %s236_s3, [#allocation4], %s180_s27, %s180_s27, %s181_s28  }
  0xf5   :  { %175 = dma.done.wait [#allocation4], 256  }
  0xf6   :  { %176 = vsyncadd [#allocation4], 4294967040 }
  0xf7   :  { %128 = vsyncpa [#allocation4], 1 }

// kernel: multi_head_attention.3
= control target key start
LH: loop header
LB: loop body
LE: loop exit
PB: predicated region body
PF: predicated region fallthrough
CT: control target
= control target key end

     0   :  { %10 = vsyncpa [#allocation4], 0  ;;  %s1493_s0 = inlined_call_operand.hbm [shape: f32[16,32], index: 0, kind: input, shape index: {}]   ;;  %s1494_s1 = inlined_call_operand.vmem [shape: f32[16,32], index: 1, kind: input, shape index: {}]   ;;  %s1495_s2 = inlined_call_operand.hbm [shape: f32[16,32], index: 2, kind: input, shape index: {}]   ;;  %s1496_s3 = inlined_call_operand.hbm [shape: bf16[3,32,32], index: 3, kind: input, shape index: {}]   ;;  %s1497_s4 = inlined_call_operand.vmem [shape: f32[3,1,32], index: 4, kind: input, shape index: {}]   ;;  %s1498_s5 = inlined_call_operand.vmem [shape: bf16[3,16,32], index: 5, kind: output, shape index: {}]  }
   0x1   :  { %12 = vsyncpa [#allocation4 + $0x1], 0 }
   0x2   :  { %13 = vsyncpa [#allocation6], 0 }
   0x3   :  { %15 = vsyncpa [#allocation6 + $0x1], 0  ;;  %s1250_s18 = smov 0   ;;  %s1252_s19 = smov 0  }
   0x4   :  { %s1254_s20 = smov 0   ;;  %s1256_s21 = smov 0  }
   0x5   :  { %s1258_s22 = smov 0   ;;  %s1260_s23 = smov 0  }
   0x6 LB: > { %s904_s24 = sadd.s32 4294967295, %s1204_s23   ;;  %p161_p0 = scmp.ne.s32.totalorder %s1192_s20, %s1188_s19  ;;  %s1204_s23 = sphi %s1260_s23, %s21_s23   ;;  %s1200_s22 = sphi %s1258_s22, %s1517_s22   ;;  %s1196_s21 = sphi %s1256_s21, %s1516_s21   ;;  %s1192_s20 = sphi %s1254_s20, %s1515_s20   ;;  %s1188_s19 = sphi %s1252_s19, %s1514_s19   ;;  %s1184_s18 = sphi %s1250_s18, %s1513_s18  }
   0x7   : > { %p162_p1 = scmp.eq.s32.totalorder %s1204_s23, 0  ;;  %p167_p2 = scmp.ne.s32.totalorder %s1188_s19, %s1184_s18 }
   0x8   : > { %p1285_p3 = scmp.eq.s32.totalorder %s904_s24, 0  ;;  %p994_p5 = scmp.lt.s32.totalorder %s1204_s23, 3 }
   0x9   : > { %p163_p4 = por %p162_p1, %p161_p0  ;;  %s289_s28 = sand.u32 1, %s1204_s23  }
   0xa   : > { %s1503_s25 = scalar_select %p1285_p3, 1, 0 }
   0xb   : > { %p1292_p6 = por %p1285_p3, %p167_p2  ;;  %p1296_p7 = pnand %p994_p5, %p162_p1 }
   0xc   : > { %p1301_p8 = pnand %p994_p5, %p163_p4  ;;  %s1206_s30 = smov [#allocation5]  }
   0xd   : > { %s1504_s26 = scalar_select %p1292_p6, 1, 0 }
   0xe   : > { %s1506_s29 = scalar_select %p1301_p8, 1, 0 }
   0xf   : > { %s303_s6 = sshll.u32 %s1206_s30, 4  ;;  %s1306_s7 = scalar_lea.sflag [#allocation6], %s289_s28  ;;  %s304_s6 = int_to_ptr.vmem [resolvable:$true] %s303_s6 }
  0x10   : > { %s1060_s10 = scalar_lea.hbm %s1495_s2, 256  ;;  %p1062_p11 = pneg %p1296_p7 }
  0x11   : > { %p1061_p10 = scmp.ne.s32.totalorder %s1495_s2, %s1060_s10  ;;  %p1067_p0 = scmp.lt.u32.totalorder %s1060_s10, %s1495_s2 }
  0x13   : > { %p1063_p12 = pnand %p1062_p11, %p1061_p10 }
  0x15   : > { %p1064_p13 = pneg %p1063_p12 }
  0x17   : > { %p1069_p1 = pnand %p1067_p0, %p1064_p13 }
  0x19   : > { %1072 = shalt.err (!%p1069_p1)
}
  0x1a   : > { %s1073_s15 = scalar_lea.vmem %s304_s6, 256  ;;  %s1080_s16 = scalar_lea.vmem %s304_s6, 512 }
  0x1b   : > { %p1074_p2 = scmp.ne.s32.totalorder %s304_s6, %s1073_s15  ;;  %p1081_p9 = scmp.lt.s32.totalorder %s304_s6, %s304_s6 }
  0x1c   : > { %p1082_p6 = scmp.lt.s32.totalorder %s1080_s16, %s1073_s15 }
  0x1d   : > { %p1076_p4 = pnand %p1074_p2, %p1062_p11 }
  0x1e   : > { %p1083_p3 = por %p1082_p6, %p1081_p9 }
  0x1f   : > { %p1077_p5 = pneg %p1076_p4 }
  0x21   : > { %p1084_p8 = pnand %p1083_p3, %p1077_p5 }
  0x23   : > { %1087 = shalt.err (!%p1084_p8)
}
  0x24   : > { %s1207_s17 = smov 128   ;;  %s1208_s18 = smov 8  }
  0x25   : > { %990 = dma.hbm_to_vmem [thread:$0]  (!%p1296_p7), %s1495_s2, 256, %s304_s6, %s1306_s7, %s1207_s17, %s1207_s17, %s1208_s18  }
  0x26   : > { %p344_p10 = scmp.lt.s32.totalorder %s1204_s23, 4  ;;  %p1507_p12 = scmp.ge.s32.totalorder %s1204_s23, 1 }
  0x27   : > { %s1209_s9 = smov [#allocation3]   ;;  %s1088_s13 = scalar_lea.hbm %s1493_s0, 256 }
  0x28   : > { %p1334_p13 = pnand %p1507_p12, %p344_p10  ;;  %s263_s10 = sshll.u32 %s1209_s9, 4  ;;  %s264_s10 = int_to_ptr.vmem [resolvable:$true] %s263_s10 }
  0x29   : > { %p1089_p3 = scmp.ne.s32.totalorder %s1493_s0, %s1088_s13  ;;  %p1095_p9 = scmp.lt.u32.totalorder %s1088_s13, %s1493_s0 }
  0x2a   : > { %s1508_s8 = scalar_select %p1334_p13, 1, 0 }
  0x2b   : > { %p1091_p6 = pnand %p1089_p3, %p1062_p11 }
  0x2d   : > { %p1092_p8 = pneg %p1091_p6 }
  0x2f   : > { %p1097_p0 = pnand %p1095_p9, %p1092_p8 }
  0x31   : > { %1100 = shalt.err (!%p1097_p0)
}
  0x32   : > { %s1101_s28 = scalar_lea.vmem %s264_s10, 256  ;;  %s1108_s30 = scalar_lea.vmem %s264_s10, 512 }
  0x33   : > { %p1102_p1 = scmp.ne.s32.totalorder %s264_s10, %s1101_s28  ;;  %p1109_p5 = scmp.lt.s32.totalorder %s264_s10, %s264_s10 }
  0x34   : > { %p1110_p10 = scmp.lt.s32.totalorder %s1108_s30, %s1101_s28 }
  0x35   : > { %p1104_p2 = pnand %p1102_p1, %p1062_p11 }
  0x36   : > { %p1111_p12 = por %p1110_p10, %p1109_p5 }
  0x37   : > { %p1105_p4 = pneg %p1104_p2 }
  0x39   : > { %p1112_p13 = pnand %p1111_p12, %p1105_p4 }
  0x3b   : > { %1115 = shalt.err (!%p1112_p13)
}
  0x3c   : > { %987 = dma.hbm_to_vmem [thread:$0]  (!%p1296_p7), %s1493_s0, 256, %s264_s10, [#allocation4], %s1207_s17, %s1207_s17, %s1208_s18  }
  0x3d   : > { %s154_s12 = sadd.s32 1, %s1192_s20  ;;  %s39_s13 = sadd.s32 1, %s1200_s22 }
  0x3e   : > { %s315_s14 = sand.u32 1, %s1192_s20   ;;  %p41_p11 = scmp.ge.s32.totalorder %s39_s13, 3 }
  0x3f   : > { %s911_s15 = sshll.u32 %s315_s14, 4  ;;  %s937_s6 = sshll.u32 %s1200_s22, 8 }
  0x40   : > { %s1519_s13 = smov (%p41_p11, %s39_s13), 0  ;;  %s1367_s28 = scalar_lea.hbm %s1496_s3, %s937_s6 }
  0x41   : > { %s317_s17 = scalar_lea.vmem [#allocation7], %s911_s15  ;;  %s147_s10 = ssub.s32 %s1200_s22, %s1519_s13 }
  0x42   : > { %s327_s18 = sshll.u32 %s317_s17, 4  ;;  %p152_p7 = scmp.eq.s32.totalorder %s147_s10, 0  ;;  %s1371_s18 = int_to_ptr.vmem [resolvable:$true] %s327_s18 }
  0x43   : > { %s1116_s9 = scalar_lea.hbm %s1367_s28, 256  ;;  %p1509_p3 = scmp.ne.s32.totalorder %s1506_s29, 0 }
  0x44   : > { %s1374_s30 = scalar_select %p152_p7, %s1192_s20, %s154_s12  }
  0x45   : > { %p1117_p13 = scmp.ne.s32.totalorder %s1367_s28, %s1116_s9  ;;  %p1118_p6 = pneg %p1509_p3 }
  0x46   : > { %s1121_s6 = scalar_lea.hbm %s1496_s3, 768  ;;  %p1122_p0 = scmp.lt.u32.totalorder %s1367_s28, %s1496_s3 }
  0x47   : > { %p1119_p8 = pnand %p1118_p6, %p1117_p13  ;;  %p1123_p1 = scmp.lt.u32.totalorder %s1121_s6, %s1116_s9 }
  0x48   : > { %p1125_p4 = scmp.lt.u32.totalorder %s1116_s9, %s1367_s28 }
  0x49   : > { %p1120_p9 = pneg %p1119_p8  ;;  %p1124_p2 = por %p1123_p1, %p1122_p0 }
  0x4b   : > { %p1126_p5 = por %p1125_p4, %p1124_p2 }
  0x4d   : > { %p1127_p10 = pnand %p1126_p5, %p1120_p9 }
  0x4f   : > { %1130 = shalt.err (!%p1127_p10)
}
  0x50   : > { %s1131_s12 = scalar_lea.vmem %s1371_s18, 256  ;;  %s1210_s16 = smov [#allocation7]  }
  0x51   : > { %p1132_p12 = scmp.ne.s32.totalorder %s1371_s18, %s1131_s12  ;;  %s1136_s17 = sshll.u32 %s1210_s16, 4  ;;  %s1137_s17 = int_to_ptr.vmem [resolvable:$false] %s1136_s17 }
  0x52   : > { %s1138_s10 = scalar_lea.vmem %s1137_s17, 512  ;;  %p1139_p13 = scmp.lt.s32.totalorder %s1371_s18, %s1137_s17 }
  0x53   : > { %p1134_p11 = pnand %p1132_p12, %p1118_p6  ;;  %p1140_p8 = scmp.lt.s32.totalorder %s1138_s10, %s1131_s12 }
  0x55   : > { %p1135_p7 = pneg %p1134_p11  ;;  %p1141_p0 = por %p1140_p8, %p1139_p13 }
  0x57   : > { %p1142_p1 = pnand %p1141_p0, %p1135_p7 }
  0x59   : > { %1145 = shalt.err (!%p1142_p1)
}
  0x5a   : > { %s1211_s9 = smov 64   ;;  %s1212_s11 = smov 4  }
  0x5b   : > { %993 = dma.hbm_to_vmem [thread:$0]  (!%p1509_p3), %s1367_s28, 256, %s1371_s18, %s1306_s7, %s1211_s9, %s1211_s9, %s1212_s11  }
  0x5c   : > { %p1510_p6 = scmp.ne.s32.totalorder %s1508_s8, 0 }
  0x5d   : > { %p1511_p9 = scmp.ne.s32.totalorder (!%p1510_p6), %s1503_s25, 0 }
  0x5e   : > { %348 = sbr.rel (%p1510_p6) target bundleno = 805 (0x325), region = 40 }
  0x65   : > { %1171 = dma.done.wait (%p1511_p9), [#allocation4], 256  }
  0x66   : > { %1173 = vsyncadd (%p1511_p9), [#allocation4], 4294967040  ;;  %s359_s14 = sand.u32 1, %s904_s24  }
  0x67   : > { %s360_s6 = scalar_lea.sflag [#allocation6], %s359_s14 }
  0x68   : > { %1175 = dma.done.wait (%p1511_p9), %s360_s6, 256  }
  0x69   : > { %1177 = vsyncadd (%p1511_p9), %s360_s6, 4294967040  ;;  %s370_s29 = sand.u32 1, %s1188_s19   ;;  %p1512_p3 = scmp.ne.s32.totalorder %s1504_s26, 0 }
  0x6a   : > { %s917_s7 = sshll.u32 %s370_s29, 4 }
  0x6b   : > { %s372_s8 = scalar_lea.vmem [#allocation7], %s917_s7 }
  0x6c   : > { %1179 = dma.done.wait (%p1512_p3), %s360_s6, 256  }
  0x6d   : > { %1181 = vsyncadd (%p1512_p3), %s360_s6, 4294967040  ;;  %p452_p2 = scmp.lt.s32.totalorder %s1196_s21, 2  ;;  %vm476_vm0 = vcmask 261120   ;;  %v1213_v0 = vmov 0.0   ;;  %v1435_v1 = vld [vmem:[%s372_s8] sm:$0xf] }
  0x6e   : > { %477 = vst.msk [vmem:[#allocation2] sm:$0xff] %vm476_vm0, %v1213_v0  ;;  %478 = vst.msk [vmem:[#allocation2 + $0x8] sm:$0xff] %vm476_vm0, %v1213_v0  ;;  %v480_v2 = vld [vmem:[%s372_s8 + $0x4] sm:$0xf]  ;;  %v1437_v3 = vld [vmem:[%s372_s8 + $0x8] sm:$0xf] }
  0x6f   : > { %s1423_s24 = scalar_select %p452_p2, %s1196_s21, 2  ;;  %v1439_v4 = vld [vmem:[%s372_s8 + $0xc] sm:$0xf] }
  0x70   : > { %p920_p4 = scmp.ne.s32.totalorder %s1196_s21, 0 }
  0x71   : > { %s457_s18 = scalar_lea.vmem %s1497_s4, %s1423_s24  ;;  %s938_s15 = sshll.u32 %s1423_s24, 3  ;;  %v921_v5 = vcombine.low (!%p920_p4), %v1435_v1, %v480_v2  ;;  %v1214_v6 = vmov (!%p920_p4), 0.0   ;;  %vm1215_vm1 = vmmov (!%p920_p4), 0   ;;  %v922_v7 = vcombine.low (!%p920_p4), %v1437_v3, %v1439_v4  ;;  %v489_v8 = vld [vmem:[#allocation3] sm:$0xff] (!%p920_p4)  ;;  %v490_v9 = vld [vmem:[#allocation3 + $0x8] sm:$0xff] (!%p920_p4) }
  0x72   : > { %s1433_s12 = scalar_lea.vmem %s1498_s5, %s938_s15  ;;  %486 = sbr.rel (%p920_p4) target bundleno = 339 (0x153), region = 60  ;;  %950 = vmatprep.subr.bf16.mxu0 (!%p920_p4), %v1214_v6  ;;  %954 = vmatprep.mubr.msk.bf16.mxu0 (!%p920_p4), %vm1215_vm1, %v1214_v6  ;;  %v491_v10 = vpack.c.bf16 (!%p920_p4), %v490_v9, %v489_v8 }
  0x73   : > { %951 = vmatpush3.bf16.msra.mxu0 (!%p920_p4), %v921_v5 }
  0x74   : > { %952 = vmatprep.subr.bf16.mxu0 (!%p920_p4), %v1214_v6 }
  0x75   : > { %v487_v11 = vld [vmem:[#allocation2] sm:$0xff] (!%p920_p4)  ;;  %v488_v13 = vld [vmem:[#allocation2 + $0x8] sm:$0xff] (!%p920_p4) }
  0x77   : > { %953 = vmatpush3.bf16.msra.mxu0 (!%p920_p4), %v922_v7 }
  0x7a   : > { %955 = vmatmul.mubr.msk.bf16.vlgmr.msra.gmra.mrb[0].mxu0 %vm476_vm0, %v491_v10 }
 0x14d   : > { %v542_v12 = vpop.f32.mrb[0].mxu0 }
 0x14e   : > { %v549_v14 = vadd.f32 %v542_v12, %v487_v11  ;;  %v956_v15 = vpop.f32.mrb[1].mxu0 }
 0x14f   : > { %v545_v16 = vpop.f32.mrb[2].mxu0 }
 0x150   : > { %551 = vst.msk [vmem:[#allocation2] sm:$0xff] %vm476_vm0, %v549_v14  ;;  %v550_v17 = vadd.f32 %v545_v16, %v488_v13  ;;  %v957_v18 = vpop.f32.mrb[3].mxu0 }
 0x152   : > { %552 = vst.msk [vmem:[#allocation2 + $0x8] sm:$0xff] %vm476_vm0, %v550_v17 }
 0x153 PF: > { %p924_p5 = scmp.ne.s32.totalorder %s1196_s21, 1 }
 0x154   : > { %v925_v19 = vcombine.low (!%p924_p5), %v1435_v1, %v480_v2  ;;  %v1216_v20 = vmov (!%p924_p5), 0.0   ;;  %vm1217_vm2 = vmmov (!%p924_p5), 0   ;;  %v926_v21 = vcombine.low (!%p924_p5), %v1437_v3, %v1439_v4  ;;  %v559_v22 = vld [vmem:[%s1494_s1] sm:$0xff] (!%p924_p5)  ;;  %v560_v23 = vld [vmem:[%s1494_s1 + $0x8] sm:$0xff] (!%p924_p5) }
 0x155   : > { %556 = sbr.rel (%p924_p5) target bundleno = 566 (0x236), region = 64  ;;  %958 = vmatprep.subr.bf16.mxu0 (!%p924_p5), %v1216_v20  ;;  %962 = vmatprep.mubr.msk.bf16.mxu0 (!%p924_p5), %vm1217_vm2, %v1216_v20  ;;  %v561_v24 = vpack.c.bf16 (!%p924_p5), %v560_v23, %v559_v22 }
 0x156   : > { %959 = vmatpush3.bf16.msra.mxu0 (!%p924_p5), %v925_v19 }
 0x157   : > { %960 = vmatprep.subr.bf16.mxu0 (!%p924_p5), %v1216_v20  ;;  %v557_v25 = vld [vmem:[#allocation2] sm:$0xff] (!%p924_p5) }
 0x159   : > { %v558_v27 = vld [vmem:[#allocation2 + $0x8] sm:$0xff] (!%p924_p5) }
 0x15a   : > { %961 = vmatpush3.bf16.msra.mxu0 (!%p924_p5), %v926_v21 }
 0x15d   : > { %963 = vmatmul.mubr.msk.bf16.vlgmr.msra.gmra.mrb[0].mxu0 %vm476_vm0, %v561_v24 }
 0x230   : > { %v612_v26 = vpop.f32.mrb[0].mxu0 }
 0x231   : > { %v619_v28 = vadd.f32 %v612_v26, %v557_v25  ;;  %v964_v29 = vpop.f32.mrb[1].mxu0 }
 0x232   : > { %v615_v30 = vpop.f32.mrb[2].mxu0 }
 0x233   : > { %621 = vst.msk [vmem:[#allocation2] sm:$0xff] %vm476_vm0, %v619_v28  ;;  %v620_v31 = vadd.f32 %v615_v30, %v558_v27  ;;  %v965_v32 = vpop.f32.mrb[3].mxu0 }
 0x235   : > { %622 = vst.msk [vmem:[#allocation2 + $0x8] sm:$0xff] %vm476_vm0, %v620_v31 }
 0x236 PF: > { %p928_p10 = scmp.ne.s32.totalorder %s1196_s21, 2 }
 0x237   : > { %v929_v33 = vcombine.low (!%p928_p10), %v1435_v1, %v480_v2  ;;  %v1218_v34 = vmov (!%p928_p10), 0.0   ;;  %vm1219_vm3 = vmmov (!%p928_p10), 0   ;;  %v930_v35 = vcombine.low (!%p928_p10), %v1437_v3, %v1439_v4  ;;  %v629_v36 = vld [vmem:[#allocation5] sm:$0xff] (!%p928_p10)  ;;  %v630_v37 = vld [vmem:[#allocation5 + $0x8] sm:$0xff] (!%p928_p10) }
 0x238   : > { %626 = sbr.rel (%p928_p10) target bundleno = 793 (0x319), region = 68  ;;  %966 = vmatprep.subr.bf16.mxu0 (!%p928_p10), %v1218_v34  ;;  %970 = vmatprep.mubr.msk.bf16.mxu0 (!%p928_p10), %vm1219_vm3, %v1218_v34  ;;  %v631_v38 = vpack.c.bf16 (!%p928_p10), %v630_v37, %v629_v36 }
 0x239   : > { %967 = vmatpush3.bf16.msra.mxu0 (!%p928_p10), %v929_v33 }
 0x23a   : > { %968 = vmatprep.subr.bf16.mxu0 (!%p928_p10), %v1218_v34  ;;  %v627_v39 = vld [vmem:[#allocation2] sm:$0xff] (!%p928_p10) }
 0x23c   : > { %v628_v41 = vld [vmem:[#allocation2 + $0x8] sm:$0xff] (!%p928_p10) }
 0x23d   : > { %969 = vmatpush3.bf16.msra.mxu0 (!%p928_p10), %v930_v35 }
 0x240   : > { %971 = vmatmul.mubr.msk.bf16.vlgmr.msra.gmra.mrb[0].mxu0 %vm476_vm0, %v631_v38 }
 0x313   : > { %v682_v40 = vpop.f32.mrb[0].mxu0 }
 0x314   : > { %v689_v42 = vadd.f32 %v682_v40, %v627_v39  ;;  %v972_v43 = vpop.f32.mrb[1].mxu0 }
 0x315   : > { %v685_v44 = vpop.f32.mrb[2].mxu0 }
 0x316   : > { %691 = vst.msk [vmem:[#allocation2] sm:$0xff] %vm476_vm0, %v689_v42  ;;  %v690_v45 = vadd.f32 %v685_v44, %v628_v41  ;;  %v973_v46 = vpop.f32.mrb[3].mxu0 }
 0x318   : > { %692 = vst.msk [vmem:[#allocation2 + $0x8] sm:$0xff] %vm476_vm0, %v690_v45 }
 0x319 PF: > { %v932_v48 = vld [vmem:[%s457_s18] ss:$0 sm:$0xff]  ;;  %vm715_vm4 = vcmask 257024  }
 0x31d   : > { %v696_v47 = vld [vmem:[#allocation2] sm:$0xff] }
 0x31e   : > { %v705_v50 = vadd.f32 %v932_v48, %v696_v47 }
 0x31f   : > { %v697_v49 = vld [vmem:[#allocation2 + $0x8] sm:$0xff] }
 0x320   : > { %v706_v51 = vadd.f32 %v932_v48, %v697_v49  ;;  %v939_v52 = vpack.c.bf16 %v705_v50, %v705_v50 }
 0x322   : > { %v940_v53 = vpack.c.bf16 %v706_v51, %v706_v51  ;;  %716 = vst.msk [vmem:[%s1433_s12] sm:$0xf] %vm715_vm4, %v939_v52 }
 0x324   : > { %717 = vst.msk [vmem:[%s1433_s12 + $0x4] sm:$0xf] %vm715_vm4, %v940_v53 }
 0x325 PF: > { %s21_s23 = sadd.s32 1, %s1204_s23   ;;  %s1513_s18 = smov %s1188_s19 }
 0x326   : > { %p18_p12 = scmp.ge.s32.totalorder %s21_s23, 5   ;;  %s1514_s19 = smov %s1192_s20 }
 0x327   : > { %s1515_s20 = smov %s1374_s30  ;;  %s1516_s21 = smov %s1200_s22 }
 0x328   : > { %s1517_s22 = smov %s1519_s13  ;;  %20 = sbr.rel (!%p18_p12) target bundleno = 6 (0x6), region = 130 }
 0x32f   :  { %754 = vsyncpa [#allocation4], 1 }
 0x330   :  { %756 = vsyncpa [#allocation4 + $0x1], 1 }
 0x331   :  { %757 = vsyncpa [#allocation6], 1 }
 0x332   :  { %759 = vsyncpa [#allocation6 + $0x1], 1 }

// kernel: multi_head_attention.4
= control target key start
LH: loop header
LB: loop body
LE: loop exit
PB: predicated region body
PF: predicated region fallthrough
CT: control target
= control target key end

     0   :  { %10 = vsyncpa [#allocation3], 0  ;;  %s1440_s0 = inlined_call_operand.vmem [shape: bf16[3,2,8,32], index: 0, kind: input, shape index: {}, may-alias: {0,1,2}]   ;;  %s1441_s1 = inlined_call_operand.vmem [shape: bf16[3,2,8,32], index: 1, kind: input, shape index: {}, may-alias: {0,1,2}]   ;;  %s1442_s2 = inlined_call_operand.vmem [shape: bf16[3,2,8,32], index: 2, kind: input, shape index: {}, may-alias: {0,1,2}]   ;;  %s1443_s3 = inlined_call_operand.vmem [shape: bf16[2,8,32], index: 3, kind: output, shape index: {0}]   ;;  %s1444_s4 = inlined_call_operand.hbm [shape: bf16[2,4,8,8], index: 4, kind: output, shape index: {1}]  }
   0x1   :  { %12 = vsyncpa [#allocation3 + $0x1], 0  ;;  %s1226_s15 = smov 0   ;;  %s1228_s16 = smov 0  }
   0x2   :  { %s1230_s17 = smov 0   ;;  %s1232_s18 = smov 0  }
   0x3   :  { %s1234_s19 = smov 0   ;;  %s1236_s20 = smov 0  }
   0x4 LB: > { %s924_s21 = sadd.s32 4294967295, %s1188_s20   ;;  %s925_s22 = sadd.s32 4294967294, %s1188_s20   ;;  %s1188_s20 = sphi %s1236_s20, %s18_s20   ;;  %s1184_s19 = sphi %s1234_s19, %s1451_s19   ;;  %s1180_s18 = sphi %s1232_s18, %s1450_s18   ;;  %s1176_s17 = sphi %s1230_s17, %s1449_s17   ;;  %s1172_s16 = sphi %s1228_s16, %s1448_s16   ;;  %s1168_s15 = sphi %s1226_s15, %s1447_s15  }
   0x5   : > { %s30_s23 = sadd.s32 1, %s1184_s19  ;;  %s147_s24 = sadd.s32 1, %s1176_s17 }
   0x6   : > { %p32_p0 = scmp.ge.s32.totalorder %s30_s23, 2  ;;  %p157_p1 = scmp.ne.s32.totalorder %s1176_s17, %s1172_s16 }
   0x7   : > { %p158_p2 = scmp.eq.s32.totalorder %s924_s21, 1  ;;  %p163_p3 = scmp.ne.s32.totalorder %s1172_s16, %s1168_s15 }
   0x8   : > { %s1453_s23 = smov (%p32_p0, %s30_s23), 0  ;;  %p164_p5 = scmp.eq.s32.totalorder %s925_s22, 1 }
   0x9   : > { %p1266_p4 = por %p158_p2, %p157_p1  ;;  %s142_s26 = ssub.s32 %s1184_s19, %s1453_s23 }
   0xa   : > { %p928_p6 = scmp.ge.s32.totalorder %s1188_s20, 1  ;;  %p145_p7 = scmp.eq.s32.totalorder %s142_s26, 0 }
   0xb   : > { %p1273_p8 = por %p164_p5, %p163_p3  ;;  %p208_p9 = scmp.lt.s32.totalorder %s1188_s20, 3 }
   0xc   : > { %s1279_s28 = scalar_select %p145_p7, %s1176_s17, %s147_s24  }
   0xd   : > { %p209_p10 = pnand %p928_p6, %p208_p9 }
   0xe   : > { %p253_p11 = scmp.lt.s32.totalorder (!%p209_p10), %s1180_s18, 1  ;;  %v1190_v0 = vmov (!%p209_p10), 0.0   ;;  %vm1191_vm0 = vmmov (!%p209_p10), 0   ;;  %vm281_vm1 = vcmask (!%p209_p10), 64512   ;;  %s1192_s11 = smov (!%p209_p10), 120   ;;  %vm345_vm2 = vcmask (!%p209_p10), 1043456  }
   0xf   : > { %212 = sbr.rel (%p209_p10) target bundleno = 1482 (0x5ca), region = 32  ;;  %978 = vmatprep.subr.bf16.mxu0 (!%p209_p10), %v1190_v0  ;;  %980 = vmatprep.mubr.msk.bf16.mxu0 (!%p209_p10), %vm1191_vm0, %v1190_v0  ;;  %s1193_s12 = smov (!%p209_p10), 112   ;;  %vm340_vm3 = vcmask (!%p209_p10), 60416  }
  0x10   : > { %984 = vmatprep.subr.bf16.mxu1 (!%p209_p10), %v1190_v0  ;;  %986 = vmatprep.mubr.msk.bf16.mxu1 (!%p209_p10), %vm1191_vm0, %v1190_v0  ;;  %s1194_s13 = smov (!%p209_p10), 104   ;;  %s250_s24 = sand.u32 (!%p209_p10), 1, %s1172_s16  }
  0x11   : > { %s929_s26 = sshll.u32 (!%p209_p10), %s250_s24, 4  ;;  %s1196_s8 = smov (!%p209_p10), 16  }
  0x12   : > { %s961_s9 = sshll.u32 (!%p209_p10), %s1180_s18, 8  ;;  %s1391_s14 = scalar_lea.sflag (!%p209_p10), [#allocation3], %s250_s24 }
  0x16   : > { %s254_s29 = scalar_select %p253_p11, %s1180_s18, 1 }
  0x17   : > { %s1197_s18 = smov [#allocation2]  }
  0x18   : > { %s1289_s30 = sshll.u32 %s254_s29, 2  ;;  %s1326_s29 = scalar_lea.vmem [#allocation2], %s929_s26 }
  0x19   : > { %s850_s7 = scalar_lea.vmem %s1441_s1, %s1289_s30  ;;  %s259_s10 = scalar_lea.vmem %s1440_s0, %s1289_s30 }
  0x1a   : > { %v934_v1 = vld [vmem:[%s850_s7 + $0x8] sm:$0xf]  ;;  %v278_v3 = vld [vmem:[%s259_s10] sm:$0xf]  ;;  %s853_s22 = scalar_lea.vmem %s1442_s2, %s1289_s30  ;;  %s1347_s7 = scalar_lea.vmem %s1443_s3, %s1289_s30 }
  0x1b   : > { %v286_v2 = vsel %vm281_vm1, %v934_v1, 0  ;;  %v939_v9 = vcombine.low %v934_v1, %v934_v1  ;;  %v938_v10 = vcombine.low %v278_v3, %v278_v3  ;;  %v1315_v16 = vld [vmem:[%s853_s22 + $0x10] sm:$0xf]  ;;  %s1195_s30 = smov 8   ;;  %s788_s10 = sshll.u32 %s1326_s29, 4  ;;  %s1387_s10 = int_to_ptr.vmem [resolvable:$true] %s788_s10 }
  0x1c   : > { %979 = vmatpush3.bf16.xpose.msra.mxu0 %v286_v2  ;;  %v347_v17 = vsel %vm345_vm2, %v1315_v16, 0  ;;  %v942_v61 = vcombine.low %v1315_v16, %v1315_v16  ;;  %s1110_s21 = scalar_lea.vmem %s1387_s10, 256  ;;  %s1114_s22 = sshll.u32 %s1197_s18, 4  ;;  %s1115_s22 = int_to_ptr.vmem [resolvable:$false] %s1114_s22 }
  0x1d   : > { %996 = vmatprep.subr.bf16.mxu0 %v1190_v0  ;;  %399 = vrot.lane.b32.xlu1 %v939_v9, %s1192_s11  ;;  %p1111_p12 = scmp.ne.s32.totalorder %s1387_s10, %s1110_s21  ;;  %s1116_s26 = scalar_lea.vmem %s1115_s22, 512 }
  0x1e   : > { %985 = vmatpush3.bf16.msra.mxu1 %v347_v17  ;;  %p1117_p1 = scmp.lt.s32.totalorder %s1387_s10, %s1115_s22  ;;  %p1118_p2 = scmp.lt.s32.totalorder %s1116_s26, %s1110_s21 }
  0x1f   : > { %990 = vmatprep.subr.bf16.mxu1 %v1190_v0  ;;  %p1112_p13 = pnand %p1111_p12, %p1266_p4 }
  0x20   : > { %p1119_p3 = por %p1118_p2, %p1117_p1 }
  0x21   : > { %394 = vrot.lane.b32.xlu1 %v938_v10, %s1192_s11  ;;  %p1113_p0 = pneg %p1112_p13 }
  0x23   : > { %981 = vmatmul.mubr.msk.bf16.vlgmr.msra.gmra.mrb[0].mxu0 %vm281_vm1, %v278_v3  ;;  %p1120_p5 = pnand %p1119_p3, %p1113_p0 }
  0x24   : > { %998 = vmatprep.mubr.msk.bf16.mxu0 %vm1191_vm0, %v1190_v0 }
  0x25   : > { %521 = vrot.lane.b32.xlu1 %v938_v10, %s1193_s12 }
  0x29   : > { %644 = vrot.lane.b32.xlu1 %v939_v9, %s1194_s13 }
  0x2d   : > { %642 = vrot.lane.b32.xlu1 %v938_v10, %s1194_s13 }
  0x8f   : > { %v400_v20 = vpop.permute.xlu1 %399 }
  0x90   : > { %v405_v22 = vsel %vm281_vm1, %v400_v20, 0 }
  0x93   : > { %v395_v24 = vpop.permute.xlu1 %394 }
  0x97   : > { %v522_v26 = vpop.permute.xlu1 %521 }
  0x9b   : > { %v645_v28 = vpop.permute.xlu1 %644 }
  0x9c   : > { %v650_v29 = vsel %vm281_vm1, %v645_v28, 0 }
  0x9f   : > { %v643_v30 = vpop.permute.xlu1 %642 }
  0xf6   : > { %v322_v4 = vpop.f32.mrb[0].mxu0 }
  0xf7   : > { %v982_v5 = vpop.f32.mrb[1].mxu0  ;;  %v328_v6 = vsel %vm281_vm1, %v322_v4, -inf }
  0xf8   : > { %329 = vmax.xlane.f32.xlu0 %v328_v6  ;;  %v325_v7 = vpop.f32.mrb[2].mxu0 }
  0xf9   : > { %v983_v8 = vpop.f32.mrb[3].mxu0 }
 0x185   : > { %v330_v11 = vpop.xlane.xlu0 %329 }
 0x186   : > { %v331_v12 = vsub.f32 %v322_v4, %v330_v11 }
 0x188   : > { %v332_v13 = vmul.f32 1.442695, %v331_v12 }
 0x18a   : > { %1094 = vpow2.f32 %v332_v13 }
 0x194   : > { %v1095_v14 = vpop.eup %1094 }
 0x195   : > { %v334_v15 = vsel %vm281_vm1, %v1095_v14, 0.0 }
 0x196   : > { %335 = vadd.xlane.f32.xlu0 %v334_v15 }
 0x1ac   : > { %523 = vrot.lane.b32.xlu0 %v939_v9, %s1193_s12 }
 0x223   : > { %v336_v18 = vpop.xlane.xlu0 %335 }
 0x224   : > { %1096 = vrcp.f32 %v336_v18 }
 0x227   : > { %v524_v25 = vpop.permute.xlu0 %523 }
 0x228   : > { %v529_v27 = vsel %vm281_vm1, %v524_v25, 0 }
 0x22e   : > { %v1097_v19 = vpop.eup %1096 }
 0x22f   : > { %v338_v21 = vmul.f32 %v1097_v19, %v1095_v14 }
 0x231   : > { %v339_v23 = vpack.c.bf16 %v338_v21, %v338_v21 }
 0x233   : > { %987 = vmatmul.mubr.msk.bf16.vlgmr.msra.gmra.mrb[0].mxu1 %vm281_vm1, %v339_v23  ;;  %341 = vst.msk [vmem:[%s1326_s29] sm:$0xf] %vm340_vm3, %v339_v23 }
 0x234   : > { %991 = vmatpush3.bf16.xpose.msra.mxu1 %v405_v22  ;;  %992 = vmatprep.mubr.msk.bf16.mxu1 %vm1191_vm0, %v1190_v0 }
 0x235   : > { %1002 = vmatprep.subr.bf16.mxu1 %v1190_v0 }
 0x23b   : > { %993 = vmatmul.mubr.msk.bf16.vlgmr.msra.gmra.mrb[4].mxu1 %vm281_vm1, %v395_v24 }
 0x23c   : > { %1003 = vmatpush3.bf16.xpose.msra.mxu1 %v529_v27  ;;  %1004 = vmatprep.mubr.msk.bf16.mxu1 %vm1191_vm0, %v1190_v0 }
 0x23d   : > { %1014 = vmatprep.subr.bf16.mxu1 %v1190_v0 }
 0x243   : > { %1005 = vmatmul.mubr.msk.bf16.vlgmr.msra.gmra.mrb[8].mxu1 %vm281_vm1, %v522_v26 }
 0x244   : > { %1015 = vmatpush3.bf16.xpose.msra.mxu1 %v650_v29  ;;  %1016 = vmatprep.mubr.msk.bf16.mxu1 %vm1191_vm0, %v1190_v0 }
 0x24b   : > { %1017 = vmatmul.mubr.msk.bf16.vlgmr.msra.gmra.mrb[12].mxu1 %vm281_vm1, %v643_v30 }
 0x306   : > { %v383_v31 = vpop.f32.mrb[0].mxu1 }
 0x307   : > { %v389_v32 = vpack.c.bf16 %v383_v31, %v383_v31  ;;  %v988_v33 = vpop.f32.mrb[1].mxu1 }
 0x308   : > { %v386_v34 = vpop.f32.mrb[2].mxu1 }
 0x309   : > { %390 = vst.msk [vmem:[%s1347_s7] sm:$0xf] %vm340_vm3, %v389_v32  ;;  %v989_v35 = vpop.f32.mrb[3].mxu1 }
 0x30e   : > { %v441_v36 = vpop.f32.mrb[4].mxu1 }
 0x30f   : > { %v994_v37 = vpop.f32.mrb[5].mxu1  ;;  %v447_v38 = vsel %vm281_vm1, %v441_v36, -inf }
 0x310   : > { %448 = vmax.xlane.f32.xlu1 %v447_v38  ;;  %v444_v39 = vpop.f32.mrb[6].mxu1 }
 0x311   : > { %v995_v40 = vpop.f32.mrb[7].mxu1 }
 0x316   : > { %v565_v41 = vpop.f32.mrb[8].mxu1 }
 0x317   : > { %v571_v42 = vsel %vm281_vm1, %v565_v41, -inf  ;;  %v1006_v43 = vpop.f32.mrb[9].mxu1 }
 0x318   : > { %572 = vmax.xlane.f32.xlu0 %v571_v42  ;;  %v568_v44 = vpop.f32.mrb[10].mxu1 }
 0x319   : > { %v1007_v45 = vpop.f32.mrb[11].mxu1 }
 0x31e   : > { %v686_v46 = vpop.f32.mrb[12].mxu1 }
 0x31f   : > { %v692_v47 = vsel %vm281_vm1, %v686_v46, -inf  ;;  %v1018_v48 = vpop.f32.mrb[13].mxu1 }
 0x320   : > { %693 = vmax.xlane.f32.xlu1 %v692_v47  ;;  %v689_v49 = vpop.f32.mrb[14].mxu1 }
 0x321   : > { %v1019_v50 = vpop.f32.mrb[15].mxu1 }
 0x39d   : > { %v449_v51 = vpop.xlane.xlu1 %448 }
 0x39e   : > { %v450_v52 = vsub.f32 %v441_v36, %v449_v51 }
 0x3a0   : > { %v451_v53 = vmul.f32 1.442695, %v450_v52 }
 0x3a2   : > { %1098 = vpow2.f32 %v451_v53 }
 0x3a5   : > { %v573_v54 = vpop.xlane.xlu0 %572 }
 0x3a6   : > { %v574_v55 = vsub.f32 %v565_v41, %v573_v54 }
 0x3a8   : > { %v575_v56 = vmul.f32 1.442695, %v574_v55 }
 0x3aa   : > { %1100 = vpow2.f32 %v575_v56 }
 0x3ac   : > { %v1099_v57 = vpop.eup %1098 }
 0x3ad   : > { %v453_v58 = vsel %vm281_vm1, %v1099_v57, 0.0  ;;  %v694_v62 = vpop.xlane.xlu1 %693 }
 0x3ae   : > { %454 = vadd.xlane.f32.xlu1 %v453_v58  ;;  %v695_v63 = vsub.f32 %v686_v46, %v694_v62 }
 0x3b0   : > { %v696_v1 = vmul.f32 1.442695, %v695_v63 }
 0x3b2   : > { %1102 = vpow2.f32 %v696_v1 }
 0x3b4   : > { %v1101_v59 = vpop.eup %1100 }
 0x3b5   : > { %v577_v60 = vsel %vm281_vm1, %v1101_v59, 0.0 }
 0x3b6   : > { %578 = vadd.xlane.f32.xlu0 %v577_v60 }
 0x3bc   : > { %v1103_v2 = vpop.eup %1102 }
 0x3bd   : > { %v698_v3 = vsel %vm281_vm1, %v1103_v2, 0.0 }
 0x3bf   : > { %585 = vrot.lane.b32.xlu1 %v942_v61, %s1193_s12 }
 0x3cc   : > { %464 = vrot.lane.b32.xlu0 %v942_v61, %s1192_s11 }
 0x3e3   : > { %699 = vadd.xlane.f32.xlu1 %v698_v3 }
 0x3f4   : > { %706 = vrot.lane.b32.xlu1 %v942_v61, %s1194_s13  ;;  %s1385_s13 = scalar_lea.hbm %s1444_s4, %s961_s9 }
 0x43b   : > { %v455_v4 = vpop.xlane.xlu1 %454 }
 0x43c   : > { %1104 = vrcp.f32 %v455_v4 }
 0x43f   : > { %v586_v10 = vpop.permute.xlu1 %585 }
 0x440   : > { %v591_v12 = vsel %vm345_vm2, %v586_v10, 0 }
 0x443   : > { %v579_v5 = vpop.xlane.xlu0 %578 }
 0x444   : > { %1106 = vrcp.f32 %v579_v5 }
 0x446   : > { %v1105_v6 = vpop.eup %1104 }
 0x447   : > { %v457_v7 = vmul.f32 %v1105_v6, %v1099_v57  ;;  %v465_v8 = vpop.permute.xlu0 %464 }
 0x448   : > { %v470_v9 = vsel %vm345_vm2, %v465_v8, 0 }
 0x449   : > { %997 = vmatpush3.bf16.msra.mxu0 %v470_v9  ;;  %v458_v11 = vpack.c.bf16 %v457_v7, %v457_v7 }
 0x44a   : > { %1008 = vmatprep.subr.bf16.mxu0 %v1190_v0 }
 0x44b   : > { %941 = vst.msk [vmem:[%s1326_s29 + $0x4] sm:$0xf] %vm340_vm3, %v458_v11 }
 0x44c   : > { %999 = vmatmul.mubr.msk.bf16.vlgmr.msra.gmra.mrb[4].mxu0 %vm281_vm1, %v458_v11 }
 0x44d   : > { %1009 = vmatpush3.bf16.msra.mxu0 %v591_v12  ;;  %1010 = vmatprep.mubr.msk.bf16.mxu0 %vm1191_vm0, %v1190_v0 }
 0x44e   : > { %v1107_v13 = vpop.eup %1106  ;;  %1020 = vmatprep.subr.bf16.mxu0 %v1190_v0 }
 0x44f   : > { %v581_v14 = vmul.f32 %v1107_v13, %v1101_v59 }
 0x451   : > { %v582_v15 = vpack.c.bf16 %v581_v14, %v581_v14 }
 0x453   : > { %946 = vst.msk [vmem:[%s1326_s29 + $0x8] sm:$0xf] %vm340_vm3, %v582_v15 }
 0x454   : > { %1011 = vmatmul.mubr.msk.bf16.vlgmr.msra.gmra.mrb[8].mxu0 %vm281_vm1, %v582_v15 }
 0x455   : > { %1022 = vmatprep.mubr.msk.bf16.mxu0 %vm1191_vm0, %v1190_v0 }
 0x470   : > { %v700_v16 = vpop.xlane.xlu1 %699 }
 0x471   : > { %1108 = vrcp.f32 %v700_v16 }
 0x474   : > { %v707_v17 = vpop.permute.xlu1 %706 }
 0x475   : > { %v712_v18 = vsel %vm345_vm2, %v707_v17, 0 }
 0x476   : > { %1021 = vmatpush3.bf16.msra.mxu0 %v712_v18 }
 0x47b   : > { %v1109_v19 = vpop.eup %1108 }
 0x47c   : > { %v702_v20 = vmul.f32 %v1109_v19, %v1103_v2 }
 0x47e   : > { %v703_v21 = vpack.c.bf16 %v702_v20, %v702_v20 }
 0x480   : > { %950 = vst.msk [vmem:[%s1326_s29 + $0xc] sm:$0xf] %vm340_vm3, %v703_v21  ;;  %1023 = vmatmul.mubr.msk.bf16.vlgmr.msra.gmra.mrb[12].mxu0 %vm281_vm1, %v703_v21 }
 0x51f   : > { %v506_v22 = vpop.f32.mrb[4].mxu0 }
 0x520   : > { %v958_v23 = vpack.c.bf16 %v506_v22, %v506_v22  ;;  %v1000_v24 = vpop.f32.mrb[5].mxu0 }
 0x521   : > { %v509_v0 = vpop.f32.mrb[6].mxu0 }
 0x522   : > { %516 = vrot.lane.b32.xlu0 %v958_v23, %s1195_s30  ;;  %v1001_v25 = vpop.f32.mrb[7].mxu0 }
 0x527   : > { %v627_v26 = vpop.f32.mrb[8].mxu0 }
 0x528   : > { %v959_v27 = vpack.c.bf16 %v627_v26, %v627_v26  ;;  %v1012_v28 = vpop.f32.mrb[9].mxu0 }
 0x529   : > { %v630_v29 = vpop.f32.mrb[10].mxu0 }
 0x52a   : > { %637 = vrot.lane.b32.xlu1 %v959_v27, %s1196_s8  ;;  %v1013_v30 = vpop.f32.mrb[11].mxu0 }
 0x52b   : > { %1123 = shalt.err (!%p1120_p5)
}
 0x52c   : > { %s1124_s24 = scalar_lea.hbm %s1385_s13, 256  ;;  %s1128_s6 = scalar_lea.hbm %s1444_s4, 512 }
 0x52d   : > { %p1125_p6 = scmp.ne.s32.totalorder %s1385_s13, %s1124_s24  ;;  %p1129_p10 = scmp.lt.u32.totalorder %s1385_s13, %s1444_s4 }
 0x52e   : > { %p1130_p11 = scmp.lt.u32.totalorder %s1128_s6, %s1124_s24  ;;  %p1132_p13 = scmp.lt.u32.totalorder %s1124_s24, %s1385_s13 }
 0x52f   : > { %p1126_p7 = pnand %p1125_p6, %p1266_p4 }
 0x530   : > { %p1131_p12 = por %p1130_p11, %p1129_p10 }
 0x531   : > { %p1127_p9 = pneg %p1126_p7 }
 0x532   : > { %p1133_p0 = por %p1132_p13, %p1131_p12 }
 0x534   : > { %p1134_p1 = pnand %p1133_p0, %p1127_p9 }
 0x536   : > { %1137 = shalt.err (!%p1134_p1)
}
 0x537   : > { %s1198_s9 = smov 64   ;;  %s1199_s11 = smov 4   ;;  %vm519_vm4 = vcmask 126016   ;;  %vm640_vm5 = vcmask 191616   ;;  %vm761_vm6 = vcmask 257216  }
 0x538   : > { %1026 = dma.vmem_to_hbm [thread:$0]  (%p1266_p4), %s1387_s10, 256, %s1385_s13, %s1391_s14, %s1198_s9, %s1198_s9, %s1199_s11  }
 0x539   : > { %s1200_s12 = smov 24  }
 0x553   : > { %v748_v31 = vpop.f32.mrb[12].mxu0 }
 0x554   : > { %v960_v32 = vpack.c.bf16 %v748_v31, %v748_v31  ;;  %v1024_v33 = vpop.f32.mrb[13].mxu0 }
 0x555   : > { %v751_v34 = vpop.f32.mrb[14].mxu0 }
 0x556   : > { %758 = vrot.lane.b32.xlu0 %v960_v32, %s1200_s12  ;;  %v1025_v35 = vpop.f32.mrb[15].mxu0 }
 0x594   : > { %v517_v36 = vpop.permute.xlu0 %516 }
 0x595   : > { %520 = vst.msk [vmem:[%s1347_s7] sm:$0xf] %vm519_vm4, %v517_v36 }
 0x59c   : > { %v638_v37 = vpop.permute.xlu1 %637 }
 0x59d   : > { %641 = vst.msk [vmem:[%s1347_s7] sm:$0xf] %vm640_vm5, %v638_v37 }
 0x5c8   : > { %v759_v38 = vpop.permute.xlu0 %758 }
 0x5c9   : > { %762 = vst.msk [vmem:[%s1347_s7] sm:$0xf] %vm761_vm6, %v759_v38 }
 0x5ca PF: > { %p1032_p4 = scmp.ge.s32.totalorder %s1188_s20, 2  ;;  %s813_s25 = sand.u32 1, %s1168_s15  }
 0x5cb   : > { %s814_s10 = scalar_lea.sflag [#allocation3], %s813_s25 }
 0x5cc   : > { %p1029_p2 = pnand %p1032_p4, %p1273_p8 }
 0x5ce   : > { %1163 = dma.done.wait (!%p1029_p2), %s814_s10, 256  }
 0x5cf   : > { %1165 = vsyncadd (!%p1029_p2), %s814_s10, 4294967040  ;;  %s18_s20 = sadd.s32 1, %s1188_s20   ;;  %s1447_s15 = smov %s1172_s16 }
 0x5d0   : > { %p15_p3 = scmp.ge.s32.totalorder %s18_s20, 4   ;;  %s1448_s16 = smov %s1176_s17 }
 0x5d1   : > { %s1449_s17 = smov %s1279_s28  ;;  %s1450_s18 = smov %s1184_s19 }
 0x5d2   : > { %s1451_s19 = smov %s1453_s23  ;;  %17 = sbr.rel (!%p15_p3) target bundleno = 4 (0x4), region = 88 }
 0x5d9   :  { %819 = vsyncpa [#allocation3], 1 }
 0x5da   :  { %821 = vsyncpa [#allocation3 + $0x1], 1 }

</bundles_post_ra>
